<compile_context>
chip_gen: v6e
topology: v6e:2x2x1
jax: 0.10.0
libtpu: 0.0.40
codegen_flags: <defaults>
</compile_context>

<pallas_src>
import functools

import jax
import jax.numpy as jnp
from jax.experimental import pallas as pl
from jax.experimental.pallas import tpu as pltpu

IN_FEATURES = 24000
H1 = 128
H2 = 32
OUT = 4


def _round_up(n, m):
    return (n + m - 1) // m * m


def mlp_kernel(x_ref, w1_ref, b1_ref, w2_ref, b2_ref, w3_ref, b3_ref,
               o_ref, acc_ref):
    """Grid axis 0 tiles the padded K=24576 reduction of the first matmul.

    acc_ref accumulates x @ W1 (f32) across K tiles; on the last tile we apply
    bias + ReLU and run the (tiny) second and third layers entirely in VMEM.
    """
    k = pl.program_id(0)

    @pl.when(k == 0)
    def _():
        acc_ref[...] = jnp.zeros_like(acc_ref)

    # bf16 x bf16 -> f32 accumulate on the MXU (single pass on v5e/v6e).
    acc_ref[...] += jnp.dot(x_ref[...], w1_ref[...],
                            preferred_element_type=jnp.float32)

    @pl.when(k == pl.num_programs(0) - 1)
    def _():
        # Layer-1 epilogue: bias + ReLU  (dropout == identity at inference).
        h1 = jnp.maximum(acc_ref[...] + b1_ref[...], 0.0)
        # Layer 2: Linear(128, 32) + ReLU.
        h2 = jnp.dot(h1, w2_ref[...], preferred_element_type=jnp.float32) + b2_ref[...]
        h2 = jnp.maximum(h2, 0.0)
        # Layer 3: Linear(32, 4).
        o_ref[...] = (jnp.dot(h2, w3_ref[...], preferred_element_type=jnp.float32)
                      + b3_ref[...]).astype(o_ref.dtype)


@functools.partial(jax.jit, static_argnames=("tk",))
def mlp_forward(x, w1, b1, w2, b2, w3, b3, *, tk=8192):
    B, K = x.shape
    assert K == IN_FEATURES

    # Zero-pad the reduction dim so every K tile is a (8,128)-aligned block and
    # the grid shrinks to 3 steps.  Zero padding keeps the matmul exact.
    k_pad = _round_up(K, tk)
    x_p = jnp.pad(x, ((0, 0), (0, k_pad - K))).astype(jnp.bfloat16)
    w1_p = jnp.pad(w1, ((0, k_pad - K), (0, 0))).astype(jnp.bfloat16)
    grid = (k_pad // tk,)

    flops = 2 * B * k_pad * H1 + 2 * B * H1 * H2 + 2 * B * H2 * OUT
    bytes_accessed = (x_p.size * 2 + w1_p.size * 2           # bf16 streams
                      + (H1 + H1 * H2 + H2 + H2 * OUT + OUT) * 4
                      + B * OUT * 4)

    return pl.pallas_call(
        mlp_kernel,
        out_shape=jax.ShapeDtypeStruct((B, OUT), jnp.float32),
        grid_spec=pltpu.PrefetchScalarGridSpec(
            num_scalar_prefetch=0,
            grid=grid,
            in_specs=[
                pl.BlockSpec((B, tk), lambda k: (0, k)),      # x K-tile (bf16)
                pl.BlockSpec((tk, H1), lambda k: (k, 0)),     # W1 K-tile (bf16)
                pl.BlockSpec((1, H1), lambda k: (0, 0)),      # b1
                pl.BlockSpec((H1, H2), lambda k: (0, 0)),     # W2
                pl.BlockSpec((1, H2), lambda k: (0, 0)),      # b2
                pl.BlockSpec((H2, OUT), lambda k: (0, 0)),    # W3
                pl.BlockSpec((1, OUT), lambda k: (0, 0)),     # b3
            ],
            out_specs=pl.BlockSpec((B, OUT), lambda k: (0, 0)),
            scratch_shapes=[pltpu.VMEM((B, H1), jnp.float32)],
        ),
        compiler_params=pltpu.CompilerParams(
            dimension_semantics=("arbitrary",),  # K is a reduction axis
        ),
        cost_estimate=pl.CostEstimate(
            flops=flops, transcendentals=0, bytes_accessed=bytes_accessed),
    )(x_p, w1_p, b1, w2, b2, w3, b3)


def init_params(key):
    """Deterministic init matching PyTorch nn.Linear default:
    U(-1/sqrt(fan_in), 1/sqrt(fan_in)) for weight and bias.
    Weights are created directly in (in_features, out_features) layout."""
    def linear(key, fan_in, fan_out):
        kw, kb = jax.random.split(key)
        bound = 1.0 / jnp.sqrt(float(fan_in))
        w = jax.random.uniform(kw, (fan_in, fan_out), jnp.float32, -bound, bound)
        b = jax.random.uniform(kb, (1, fan_out), jnp.float32, -bound, bound)
        return w, b

    k1, k2, k3 = jax.random.split(key, 3)
    w1, b1 = linear(k1, IN_FEATURES, H1)
    w2, b2 = linear(k2, H1, H2)
    w3, b3 = linear(k3, H2, OUT)
    return w1, b1, w2, b2, w3, b3


def reference_forward(x, w1, b1, w2, b2, w3, b3):
    # Matches the kernel's bf16 streaming of x / W1 with f32 accumulation, so
    # the comparison isolates kernel correctness (tiling / accumulation order).
    h1 = jnp.dot(x.astype(jnp.bfloat16), w1.astype(jnp.bfloat16),
                 preferred_element_type=jnp.float32) + b1
    h1 = jnp.maximum(h1, 0.0)
    h2 = jnp.maximum(h1 @ w2 + b2, 0.0)
    return h2 @ w3 + b3


if __name__ == "__main__":
    key = jax.random.PRNGKey(0)
    kx, kp = jax.random.split(key)

    B = 8  # small batch
    x = jax.random.normal(kx, (B, IN_FEATURES), jnp.float32)
    params = init_params(kp)

    out = mlp_forward(x, *params)
    out = jax.block_until_ready(out)

    ref = reference_forward(x, *params)
    assert out.shape == (B, OUT)
    assert jnp.allclose(out, ref, atol=1e-3, rtol=1e-3), (
        f"max abs err {jnp.max(jnp.abs(out - ref))}")

    print("KERNEL_OK")
</pallas_src>

<mosaic_0001>
module attributes {stable_mosaic.version = 11 : i64} {
  func.func @mlp_kernel(%arg0: i32, %arg1: memref<8x8192xbf16, #tpu.memory_space<vmem>>, %arg2: memref<8192x128xbf16, #tpu.memory_space<vmem>>, %arg3: memref<1x128xf32, #tpu.memory_space<vmem>>, %arg4: memref<128x32xf32, #tpu.memory_space<vmem>>, %arg5: memref<1x32xf32, #tpu.memory_space<vmem>>, %arg6: memref<32x4xf32, #tpu.memory_space<vmem>>, %arg7: memref<1x4xf32, #tpu.memory_space<vmem>>, %arg8: memref<8x4xf32, #tpu.memory_space<vmem>>, %arg9: memref<8x128xf32, #tpu.memory_space<vmem>>) attributes {dimension_semantics = [#tpu.dimension_semantics<arbitrary>], iteration_bounds = array<i64: 3>, scalar_prefetch = 0 : i64, scratch_operands = 1 : i64, tpu.core_type = #tpu.core_type<tc>, window_params = [{transform_indices = @transform_0, window_bounds = array<i64: 8, 8192>}, {transform_indices = @transform_1, window_bounds = array<i64: 8192, 128>}, {pipeline_mode = #tpu.pipeline_mode<synchronous>, transform_indices = @transform_2, window_bounds = array<i64: 1, 128>}, {pipeline_mode = #tpu.pipeline_mode<synchronous>, transform_indices = @transform_3, window_bounds = array<i64: 128, 32>}, {pipeline_mode = #tpu.pipeline_mode<synchronous>, transform_indices = @transform_4, window_bounds = array<i64: 1, 32>}, {pipeline_mode = #tpu.pipeline_mode<synchronous>, transform_indices = @transform_5, window_bounds = array<i64: 32, 4>}, {pipeline_mode = #tpu.pipeline_mode<synchronous>, transform_indices = @transform_6, window_bounds = array<i64: 1, 4>}, {pipeline_mode = #tpu.pipeline_mode<synchronous>, transform_indices = @transform_7, window_bounds = array<i64: 8, 4>}]} {
    %c0_i32 = arith.constant 0 : i32
    %0 = arith.cmpi eq, %arg0, %c0_i32 : i32
    %1 = arith.extui %0 : i1 to i32
    %c0_i32_0 = arith.constant 0 : i32
    %2 = arith.cmpi ne, %1, %c0_i32_0 : i32
    scf.if %2 {
      %cst_9 = arith.constant 0.000000e+00 : f32
      %12 = vector.broadcast %cst_9 : f32 to vector<8x128xf32>
      %c0_10 = arith.constant 0 : index
      %c0_11 = arith.constant 0 : index
      %13 = vector.load %arg9[%c0_10, %c0_11] : memref<8x128xf32, #tpu.memory_space<vmem>>, vector<8x128xf32>
      tpu.vector_store %arg9[%c0_10, %c0_11], %12 {strides = array<i32>} : memref<8x128xf32, #tpu.memory_space<vmem>>, vector<8x128xf32>,
    } else {
    }
    %c0 = arith.constant 0 : index
    %c0_1 = arith.constant 0 : index
    %3 = vector.load %arg9[%c0, %c0_1] : memref<8x128xf32, #tpu.memory_space<vmem>>, vector<8x128xf32>
    %c0_2 = arith.constant 0 : index
    %c0_3 = arith.constant 0 : index
    %4 = vector.load %arg1[%c0_2, %c0_3] : memref<8x8192xbf16, #tpu.memory_space<vmem>>, vector<8x8192xbf16>
    %c0_4 = arith.constant 0 : index
    %c0_5 = arith.constant 0 : index
    %5 = vector.load %arg2[%c0_4, %c0_5] : memref<8192x128xbf16, #tpu.memory_space<vmem>>, vector<8192x128xbf16>
    %cst = arith.constant dense<0.000000e+00> : vector<8x128xf32>
    %6 = tpu.matmul %4, %5, %cst {dimension_numbers = #tpu.dot_dimension_numbers<[1], [0], [0], [1], [0, 0, 1, 1], [], []>} : vector<8x8192xbf16>, vector<8192x128xbf16>, vector<8x128xf32> -> vector<8x128xf32>
    %7 = arith.addf %3, %6 : vector<8x128xf32>
    %c0_6 = arith.constant 0 : index
    %c0_7 = arith.constant 0 : index
    %8 = vector.load %arg9[%c0_6, %c0_7] : memref<8x128xf32, #tpu.memory_space<vmem>>, vector<8x128xf32>
    tpu.vector_store %arg9[%c0_6, %c0_7], %7 {strides = array<i32>} : memref<8x128xf32, #tpu.memory_space<vmem>>, vector<8x128xf32>,
    %c2_i32 = arith.constant 2 : i32
    %9 = arith.cmpi eq, %arg0, %c2_i32 : i32
    %10 = arith.extui %9 : i1 to i32
    %c0_i32_8 = arith.constant 0 : i32
    %11 = arith.cmpi ne, %10, %c0_i32_8 : i32
    scf.if %11 {
      %c0_9 = arith.constant 0 : index
      %c0_10 = arith.constant 0 : index
      %12 = vector.load %arg9[%c0_9, %c0_10] : memref<8x128xf32, #tpu.memory_space<vmem>>, vector<8x128xf32>
      %c0_11 = arith.constant 0 : index
      %c0_12 = arith.constant 0 : index
      %13 = vector.load %arg3[%c0_11, %c0_12] : memref<1x128xf32, #tpu.memory_space<vmem>>, vector<1x128xf32>
      %14 = vector.broadcast %13 : vector<1x128xf32> to vector<8x128xf32>
      %15 = arith.addf %12, %14 : vector<8x128xf32>
      %cst_13 = arith.constant 0.000000e+00 : f32
      %16 = vector.broadcast %cst_13 : f32 to vector<8x128xf32>
      %17 = arith.maximumf %15, %16 : vector<8x128xf32>
      %c0_14 = arith.constant 0 : index
      %c0_15 = arith.constant 0 : index
      %18 = vector.load %arg4[%c0_14, %c0_15] : memref<128x32xf32, #tpu.memory_space<vmem>>, vector<128x32xf32>
      %cst_16 = arith.constant dense<0.000000e+00> : vector<8x32xf32>
      %19 = tpu.matmul %17, %18, %cst_16 {dimension_numbers = #tpu.dot_dimension_numbers<[1], [0], [0], [1], [0, 0, 1, 1], [], []>} : vector<8x128xf32>, vector<128x32xf32>, vector<8x32xf32> -> vector<8x32xf32>
      %c0_17 = arith.constant 0 : index
      %c0_18 = arith.constant 0 : index
      %20 = vector.load %arg5[%c0_17, %c0_18] : memref<1x32xf32, #tpu.memory_space<vmem>>, vector<1x32xf32>
      %21 = vector.broadcast %20 : vector<1x32xf32> to vector<8x32xf32>
      %22 = arith.addf %19, %21 : vector<8x32xf32>
      %cst_19 = arith.constant 0.000000e+00 : f32
      %23 = vector.broadcast %cst_19 : f32 to vector<8x32xf32>
      %24 = arith.maximumf %22, %23 : vector<8x32xf32>
      %c0_20 = arith.constant 0 : index
      %c0_21 = arith.constant 0 : index
      %25 = vector.load %arg6[%c0_20, %c0_21] : memref<32x4xf32, #tpu.memory_space<vmem>>, vector<32x4xf32>
      %cst_22 = arith.constant dense<0.000000e+00> : vector<8x4xf32>
      %26 = tpu.matmul %24, %25, %cst_22 {dimension_numbers = #tpu.dot_dimension_numbers<[1], [0], [0], [1], [0, 0, 1, 1], [], []>} : vector<8x32xf32>, vector<32x4xf32>, vector<8x4xf32> -> vector<8x4xf32>
      %c0_23 = arith.constant 0 : index
      %c0_24 = arith.constant 0 : index
      %27 = vector.load %arg7[%c0_23, %c0_24] : memref<1x4xf32, #tpu.memory_space<vmem>>, vector<1x4xf32>
      %28 = vector.broadcast %27 : vector<1x4xf32> to vector<8x4xf32>
      %29 = arith.addf %26, %28 : vector<8x4xf32>
      %c0_25 = arith.constant 0 : index
      %c0_26 = arith.constant 0 : index
      %30 = vector.load %arg8[%c0_25, %c0_26] : memref<8x4xf32, #tpu.memory_space<vmem>>, vector<8x4xf32>
      tpu.vector_store %arg8[%c0_25, %c0_26], %29 {strides = array<i32>} : memref<8x4xf32, #tpu.memory_space<vmem>>, vector<8x4xf32>,
    } else {
    }
    return
  }
  func.func @transform_0(%arg0: i32) -> (i32, i32) {
    %c0_i32 = arith.constant 0 : i32
    %c0_i32_0 = arith.constant 0 : i32
    return %c0_i32, %arg0 : i32, i32
  }
  func.func @transform_1(%arg0: i32) -> (i32, i32) {
    %c0_i32 = arith.constant 0 : i32
    %c0_i32_0 = arith.constant 0 : i32
    return %arg0, %c0_i32 : i32, i32
  }
  func.func @transform_2(%arg0: i32) -> (i32, i32) {
    %c0_i32 = arith.constant 0 : i32
    %c0_i32_0 = arith.constant 0 : i32
    %c0_i32_1 = arith.constant 0 : i32
    return %c0_i32, %c0_i32_0 : i32, i32
  }
  func.func @transform_3(%arg0: i32) -> (i32, i32) {
    %c0_i32 = arith.constant 0 : i32
    %c0_i32_0 = arith.constant 0 : i32
    %c0_i32_1 = arith.constant 0 : i32
    return %c0_i32, %c0_i32_0 : i32, i32
  }
  func.func @transform_4(%arg0: i32) -> (i32, i32) {
    %c0_i32 = arith.constant 0 : i32
    %c0_i32_0 = arith.constant 0 : i32
    %c0_i32_1 = arith.constant 0 : i32
    return %c0_i32, %c0_i32_0 : i32, i32
  }
  func.func @transform_5(%arg0: i32) -> (i32, i32) {
    %c0_i32 = arith.constant 0 : i32
    %c0_i32_0 = arith.constant 0 : i32
    %c0_i32_1 = arith.constant 0 : i32
    return %c0_i32, %c0_i32_0 : i32, i32
  }
  func.func @transform_6(%arg0: i32) -> (i32, i32) {
    %c0_i32 = arith.constant 0 : i32
    %c0_i32_0 = arith.constant 0 : i32
    %c0_i32_1 = arith.constant 0 : i32
    return %c0_i32, %c0_i32_0 : i32, i32
  }
  func.func @transform_7(%arg0: i32) -> (i32, i32) {
    %c0_i32 = arith.constant 0 : i32
    %c0_i32_0 = arith.constant 0 : i32
    %c0_i32_1 = arith.constant 0 : i32
    return %c0_i32, %c0_i32_0 : i32, i32
  }
}

</mosaic_0001>

<bundles_post_ra>
// kernel: mlp_forward.1
= control target key start
LH: loop header
LB: loop body
LE: loop exit
PB: predicated region body
PF: predicated region fallthrough
CT: control target
= control target key end

     0   :  { %s8166_s24 = smov 0   ;;  %s8858_s0 = inlined_call_operand.vmem [shape: bf16[8,24576], index: 0, kind: input, shape index: {}]   ;;  %s8859_s1 = inlined_call_operand.vmem [shape: bf16[24576,128], index: 1, kind: input, shape index: {}]   ;;  %s8860_s2 = inlined_call_operand.vmem [shape: f32[1,128], index: 2, kind: input, shape index: {}]   ;;  %s8861_s3 = inlined_call_operand.vmem [shape: f32[128,32], index: 3, kind: input, shape index: {}]   ;;  %s8862_s4 = inlined_call_operand.vmem [shape: f32[1,32], index: 4, kind: input, shape index: {}]   ;;  %s8863_s5 = inlined_call_operand.vmem [shape: f32[32,4], index: 5, kind: input, shape index: {}]   ;;  %s8864_s6 = inlined_call_operand.vmem [shape: f32[1,4], index: 6, kind: input, shape index: {}]   ;;  %s8865_s7 = inlined_call_operand.vmem [shape: f32[8,4], index: 7, kind: output, shape index: {}]  }
   0x1 LB: > { %s8172_s25 = sadd.s32 4294967295, %s8121_s24   ;;  %p6167_p0 = scmp.ge.s32.totalorder %s8121_s24, 1  ;;  %s8121_s24 = sphi %s8166_s24, %s17_s24  }
   0x2   : > { %p244_p1 = scmp.lt.s32.totalorder %s8121_s24, 4 }
   0x4   : > { %p245_p2 = pnand %p6167_p0, %p244_p1 }
   0x5   : > { %s6168_s26 = sshll.u32 (!%p245_p2), %s8172_s25, 6  ;;  %s6170_s27 = sshll.u32 (!%p245_p2), %s8172_s25, 10 }
   0x6   : > { %248 = sbr.rel (%p245_p2) target bundleno = 1165 (0x48d), region = 48  ;;  %p277_p3 = scmp.lt.s32.totalorder (!%p245_p2), %s6168_s26, 191 }
   0x7   : > { %p283_p4 = scmp.lt.s32.totalorder (!%p245_p2), %s6170_s27, 3071  ;;  %p6172_p5 = scmp.ne.s32.totalorder (!%p245_p2), %s8172_s25, 0 }
   0xb   : > { %s8867_s26 = smov (!%p277_p3, %s6168_s26), 191  ;;  %s8869_s27 = smov (!%p283_p4, %s6170_s27), 3071 }
   0xc   : > { %s6169_s28 = sshll.u32 %s8867_s26, 2  ;;  %s6171_s9 = sshll.u32 %s8869_s27, 2 }
   0xd   : > { %s8181_s8 = scalar_lea.vmem %s8858_s0, %s6169_s28  ;;  %s8186_s12 = scalar_lea.vmem %s8859_s1, %s6171_s9 }
   0xe   : > { %292 = sbr.rel (%p6172_p5) target bundleno = 21 (0x15), region = 52 }
  0x13   : > { %v8123_v0 = vmov 0.0  }
  0x14   : > { %293 = vst [vmem:[#allocation2] sm:$0xff] %v8123_v0 }
  0x15 PF: > { %v7539_v1 = vld [vmem:[%s8186_s12 + $0x78] sm:$0xff]   ;;  %v7543_v5 = vld [vmem:[%s8186_s12 + $0x70] sm:$0xff]   ;;  %v7547_v9 = vld [vmem:[%s8186_s12 + $0x68] sm:$0xff]   ;;  %p6749_p6 = scmp.ne.s32.totalorder %s8172_s25, 2 }
  0x16   : > { %v7540_v2 = vld [vmem:[%s8186_s12 + $0xf8] sm:$0xff]   ;;  %6756 = vmatprep.subr.bf16.mxu0 %v7539_v1  ;;  %v7544_v6 = vld [vmem:[%s8186_s12 + $0xf0] sm:$0xff]   ;;  %v7548_v10 = vld [vmem:[%s8186_s12 + $0xe8] sm:$0xff]  }
  0x17   : > { %v7541_v3 = vld [vmem:[%s8186_s12 + $0x38] sm:$0xff]   ;;  %6778 = vmatprep.subr.bf16.mxu1 %v7540_v2  ;;  %v7545_v7 = vld [vmem:[%s8186_s12 + $0x30] sm:$0xff]   ;;  %v7549_v11 = vld [vmem:[%s8186_s12 + $0x28] sm:$0xff]  }
  0x18   : > { %v7542_v4 = vld [vmem:[%s8186_s12 + $0xb8] sm:$0xff]   ;;  %6757 = vmatpush3.bf16.msra.mxu0 %v7541_v3  ;;  %v7546_v8 = vld [vmem:[%s8186_s12 + $0xb0] sm:$0xff]   ;;  %v7550_v12 = vld [vmem:[%s8186_s12 + $0xa8] sm:$0xff]  }
  0x19   : > { %6779 = vmatpush3.bf16.msra.mxu1 %v7542_v4  ;;  %6758 = vmatprep.subr.bf16.mxu0 %v7543_v5  ;;  %v7551_v13 = vld [vmem:[%s8186_s12 + $0x60] sm:$0xff]   ;;  %v7555_v17 = vld [vmem:[%s8186_s12 + $0x58] sm:$0xff]   ;;  %v7559_v21 = vld [vmem:[%s8186_s12 + $0x50] sm:$0xff]  }
  0x1a   : > { %6780 = vmatprep.subr.bf16.mxu1 %v7544_v6  ;;  %v7552_v14 = vld [vmem:[%s8186_s12 + $0xe0] sm:$0xff]   ;;  %v7556_v18 = vld [vmem:[%s8186_s12 + $0xd8] sm:$0xff]   ;;  %v7560_v22 = vld [vmem:[%s8186_s12 + $0xd0] sm:$0xff]  }
  0x1b   : > { %v7553_v15 = vld [vmem:[%s8186_s12 + $0x20] sm:$0xff]   ;;  %v7557_v19 = vld [vmem:[%s8186_s12 + $0x18] sm:$0xff]   ;;  %v7561_v23 = vld [vmem:[%s8186_s12 + $0x10] sm:$0xff]  }
  0x1c   : > { %6759 = vmatpush3.bf16.msra.mxu0 %v7545_v7  ;;  %v7554_v16 = vld [vmem:[%s8186_s12 + $0xa0] sm:$0xff]   ;;  %v7558_v20 = vld [vmem:[%s8186_s12 + $0x98] sm:$0xff]   ;;  %v7562_v24 = vld [vmem:[%s8186_s12 + $0x90] sm:$0xff]  }
  0x1d   : > { %6781 = vmatpush3.bf16.msra.mxu1 %v7546_v8  ;;  %6760 = vmatprep.subr.bf16.mxu0 %v7547_v9  ;;  %v7563_v25 = vld [vmem:[%s8186_s12 + $0x48] sm:$0xff]   ;;  %v7567_v29 = vld [vmem:[%s8186_s12 + $0x40] sm:$0xff]   ;;  %v7575_v39 = vld [vmem:[%s8186_s12 + $0x178] sm:$0xff]  }
  0x1e   : > { %6782 = vmatprep.subr.bf16.mxu1 %v7548_v10  ;;  %v7564_v26 = vld [vmem:[%s8186_s12 + $0xc8] sm:$0xff]   ;;  %v7568_v30 = vld [vmem:[%s8186_s12 + $0xc0] sm:$0xff]   ;;  %v7576_v40 = vld [vmem:[%s8186_s12 + $0x1f8] sm:$0xff]  }
  0x1f   : > { %v7565_v27 = vld [vmem:[%s8186_s12 + $0x8] sm:$0xff]   ;;  %v7569_v31 = vld [vmem:[%s8186_s12] sm:$0xff]   ;;  %v7577_v41 = vld [vmem:[%s8186_s12 + $0x138] sm:$0xff]  }
  0x20   : > { %6761 = vmatpush3.bf16.msra.mxu0 %v7549_v11  ;;  %v7566_v28 = vld [vmem:[%s8186_s12 + $0x88] sm:$0xff]   ;;  %v7570_v32 = vld [vmem:[%s8186_s12 + $0x80] sm:$0xff]   ;;  %v7578_v42 = vld [vmem:[%s8186_s12 + $0x1b8] sm:$0xff]  }
  0x21   : > { %6783 = vmatpush3.bf16.msra.mxu1 %v7550_v12  ;;  %6762 = vmatprep.subr.bf16.mxu0 %v7551_v13  ;;  %v295_v33 = vld [vmem:[%s8181_s8] sm:$0xff]  ;;  %v296_v34 = vld [vmem:[%s8181_s8 + $0x8] sm:$0xff]  ;;  %v7579_v43 = vld [vmem:[%s8186_s12 + $0x170] sm:$0xff]  }
  0x22   : > { %6784 = vmatprep.subr.bf16.mxu1 %v7552_v14  ;;  %v6173_v35 = vcombine.low %v295_v33, %v295_v33  ;;  %v6174_v36 = vcombine.high %v295_v33, %v295_v33  ;;  %v6175_v37 = vcombine.low %v296_v34, %v296_v34  ;;  %v6176_v38 = vcombine.high %v296_v34, %v296_v34  ;;  %v7580_v44 = vld [vmem:[%s8186_s12 + $0x1f0] sm:$0xff]   ;;  %v7583_v47 = vld [vmem:[%s8186_s12 + $0x168] sm:$0xff]   ;;  %v7587_v51 = vld [vmem:[%s8186_s12 + $0x160] sm:$0xff]  }
  0x23   : > { %v7581_v45 = vld [vmem:[%s8186_s12 + $0x130] sm:$0xff]   ;;  %v7584_v48 = vld [vmem:[%s8186_s12 + $0x1e8] sm:$0xff]   ;;  %v7588_v52 = vld [vmem:[%s8186_s12 + $0x1e0] sm:$0xff]  }
  0x24   : > { %6763 = vmatpush3.bf16.msra.mxu0 %v7553_v15  ;;  %4679 = vmatprep.mubr.bf16.mxu0 %v6174_v36  ;;  %v7582_v46 = vld [vmem:[%s8186_s12 + $0x1b0] sm:$0xff]   ;;  %v7585_v49 = vld [vmem:[%s8186_s12 + $0x128] sm:$0xff]   ;;  %v7589_v53 = vld [vmem:[%s8186_s12 + $0x120] sm:$0xff]  }
  0x25   : > { %6785 = vmatpush3.bf16.msra.mxu1 %v7554_v16  ;;  %6764 = vmatprep.subr.bf16.mxu0 %v7555_v17  ;;  %v7586_v50 = vld [vmem:[%s8186_s12 + $0x1a8] sm:$0xff]   ;;  %v7590_v54 = vld [vmem:[%s8186_s12 + $0x1a0] sm:$0xff]   ;;  %v7591_v55 = vld [vmem:[%s8186_s12 + $0x158] sm:$0xff]  }
  0x26   : > { %6786 = vmatprep.subr.bf16.mxu1 %v7556_v18  ;;  %4719 = vmatprep.mubr.bf16.mxu1 %v6176_v38  ;;  %v7592_v56 = vld [vmem:[%s8186_s12 + $0x1d8] sm:$0xff]   ;;  %v7595_v59 = vld [vmem:[%s8186_s12 + $0x150] sm:$0xff]   ;;  %v7599_v63 = vld [vmem:[%s8186_s12 + $0x148] sm:$0xff]  }
  0x27   : > { %v7593_v57 = vld [vmem:[%s8186_s12 + $0x118] sm:$0xff]   ;;  %v7596_v60 = vld [vmem:[%s8186_s12 + $0x1d0] sm:$0xff]   ;;  %v7600_v0 = vld [vmem:[%s8186_s12 + $0x1c8] sm:$0xff]  }
  0x28   : > { %6765 = vmatpush3.bf16.msra.mxu0 %v7557_v19  ;;  %v7594_v58 = vld [vmem:[%s8186_s12 + $0x198] sm:$0xff]   ;;  %v7597_v61 = vld [vmem:[%s8186_s12 + $0x110] sm:$0xff]   ;;  %v7601_v1 = vld [vmem:[%s8186_s12 + $0x108] sm:$0xff]  }
  0x29   : > { %6787 = vmatpush3.bf16.msra.mxu1 %v7558_v20  ;;  %6766 = vmatprep.subr.bf16.mxu0 %v7559_v21  ;;  %v7598_v62 = vld [vmem:[%s8186_s12 + $0x190] sm:$0xff]   ;;  %v7602_v2 = vld [vmem:[%s8186_s12 + $0x188] sm:$0xff]   ;;  %v7603_v3 = vld [vmem:[%s8186_s12 + $0x140] sm:$0xff]  }
  0x2a   : > { %6788 = vmatprep.subr.bf16.mxu1 %v7560_v22  ;;  %v7604_v4 = vld [vmem:[%s8186_s12 + $0x1c0] sm:$0xff]   ;;  %v297_v7 = vld [vmem:[%s8181_s8 + $0x10] sm:$0xff]  ;;  %v298_v10 = vld [vmem:[%s8181_s8 + $0x18] sm:$0xff] }
  0x2b   : > { %v7605_v5 = vld [vmem:[%s8186_s12 + $0x100] sm:$0xff]   ;;  %v6177_v8 = vcombine.low %v297_v7, %v297_v7  ;;  %v6178_v9 = vcombine.high %v297_v7, %v297_v7  ;;  %v6179_v11 = vcombine.low %v298_v10, %v298_v10  ;;  %v6180_v12 = vcombine.high %v298_v10, %v298_v10  ;;  %v7611_v13 = vld [vmem:[%s8186_s12 + $0x278] sm:$0xff]   ;;  %v7615_v17 = vld [vmem:[%s8186_s12 + $0x270] sm:$0xff]  }
  0x2c   : > { %6767 = vmatpush3.bf16.msra.mxu0 %v7561_v23  ;;  %v7606_v6 = vld [vmem:[%s8186_s12 + $0x180] sm:$0xff]   ;;  %v7612_v14 = vld [vmem:[%s8186_s12 + $0x2f8] sm:$0xff]   ;;  %v7616_v18 = vld [vmem:[%s8186_s12 + $0x2f0] sm:$0xff]  }
  0x2d   : > { %6789 = vmatpush3.bf16.msra.mxu1 %v7562_v24  ;;  %6768 = vmatprep.subr.bf16.mxu0 %v7563_v25  ;;  %v7613_v15 = vld [vmem:[%s8186_s12 + $0x238] sm:$0xff]   ;;  %v7617_v19 = vld [vmem:[%s8186_s12 + $0x230] sm:$0xff]   ;;  %v7619_v21 = vld [vmem:[%s8186_s12 + $0x268] sm:$0xff]  }
  0x2e   : > { %6790 = vmatprep.subr.bf16.mxu1 %v7564_v26  ;;  %v7614_v16 = vld [vmem:[%s8186_s12 + $0x2b8] sm:$0xff]   ;;  %v7618_v20 = vld [vmem:[%s8186_s12 + $0x2b0] sm:$0xff]   ;;  %v7620_v22 = vld [vmem:[%s8186_s12 + $0x2e8] sm:$0xff]  }
  0x2f   : > { %v7621_v23 = vld [vmem:[%s8186_s12 + $0x228] sm:$0xff]   ;;  %v7623_v25 = vld [vmem:[%s8186_s12 + $0x260] sm:$0xff]   ;;  %v7631_v33 = vld [vmem:[%s8186_s12 + $0x250] sm:$0xff]  }
  0x30   : > { %6769 = vmatpush3.bf16.msra.mxu0 %v7565_v27  ;;  %v7622_v24 = vld [vmem:[%s8186_s12 + $0x2a8] sm:$0xff]   ;;  %v7624_v26 = vld [vmem:[%s8186_s12 + $0x2e0] sm:$0xff]   ;;  %v7632_v34 = vld [vmem:[%s8186_s12 + $0x2d0] sm:$0xff]  }
  0x31   : > { %6791 = vmatpush3.bf16.msra.mxu1 %v7566_v28  ;;  %6770 = vmatprep.subr.bf16.mxu0 %v7567_v29  ;;  %v7625_v27 = vld [vmem:[%s8186_s12 + $0x220] sm:$0xff]   ;;  %v7627_v29 = vld [vmem:[%s8186_s12 + $0x258] sm:$0xff]   ;;  %v7634_v36 = vld [vmem:[%s8186_s12 + $0x290] sm:$0xff]  }
  0x32   : > { %6792 = vmatprep.subr.bf16.mxu1 %v7568_v30  ;;  %v7626_v28 = vld [vmem:[%s8186_s12 + $0x2a0] sm:$0xff]   ;;  %v7628_v30 = vld [vmem:[%s8186_s12 + $0x2d8] sm:$0xff]   ;;  %v7636_v38 = vld [vmem:[%s8186_s12 + $0x2c8] sm:$0xff]  }
  0x33   : > { %v7667_v7 = vld [vmem:[%s8186_s12 + $0x350] sm:$0xff]  }
  0x34   : > { %6771 = vmatpush3.bf16.msra.mxu0 %v7569_v31  ;;  %v7629_v31 = vld [vmem:[%s8186_s12 + $0x218] sm:$0xff]   ;;  %v7670_v10 = vld [vmem:[%s8186_s12 + $0x390] sm:$0xff]  }
  0x35   : > { %6793 = vmatpush3.bf16.msra.mxu1 %v7570_v32  ;;  %6800 = vmatprep.subr.bf16.mxu0 %v7575_v39  ;;  %v7630_v32 = vld [vmem:[%s8186_s12 + $0x298] sm:$0xff]   ;;  %v7637_v39 = vld [vmem:[%s8186_s12 + $0x208] sm:$0xff]  }
  0x36   : > { %6822 = vmatprep.subr.bf16.mxu1 %v7576_v40  ;;  %v7638_v40 = vld [vmem:[%s8186_s12 + $0x288] sm:$0xff]  }
  0x37   : > { %4680 = vmatmul.mubr.bf16.vlgmr.msra.gmra.mxu0 %v6173_v35  ;;  %v7633_v35 = vld [vmem:[%s8186_s12 + $0x210] sm:$0xff]  }
  0x38   : > { %4720 = vmatmul.mubr.bf16.vlgmr.msra.gmra.mxu1 %v6175_v37  ;;  %6801 = vmatpush3.bf16.msra.mxu0 %v7577_v41  ;;  %v7635_v37 = vld [vmem:[%s8186_s12 + $0x248] sm:$0xff]   ;;  %v7639_v41 = vld [vmem:[%s8186_s12 + $0x240] sm:$0xff]  }
  0x39   : > { %6823 = vmatpush3.bf16.msra.mxu1 %v7578_v42  ;;  %6802 = vmatprep.subr.bf16.mxu0 %v7579_v43  ;;  %v7640_v42 = vld [vmem:[%s8186_s12 + $0x2c0] sm:$0xff]  }
  0x3a   : > { %6824 = vmatprep.subr.bf16.mxu1 %v7580_v44  ;;  %4759 = vmatprep.mubr.bf16.mxu0 %v6178_v9  ;;  %v7641_v43 = vld [vmem:[%s8186_s12 + $0x200] sm:$0xff]   ;;  %v7669_v9 = vld [vmem:[%s8186_s12 + $0x310] sm:$0xff]  }
  0x3b   : > { %4799 = vmatprep.mubr.bf16.mxu1 %v6180_v12  ;;  %v7642_v44 = vld [vmem:[%s8186_s12 + $0x280] sm:$0xff]   ;;  %v7672_v12 = vld [vmem:[%s8186_s12 + $0x3c8] sm:$0xff]  }
  0x3c   : > { %6803 = vmatpush3.bf16.msra.mxu0 %v7581_v45  ;;  %v299_v45 = vld [vmem:[%s8181_s8 + $0x20] sm:$0xff] }
  0x3d   : > { %6825 = vmatpush3.bf16.msra.mxu1 %v7582_v46  ;;  %6804 = vmatprep.subr.bf16.mxu0 %v7583_v47  ;;  %v300_v46 = vld [vmem:[%s8181_s8 + $0x28] sm:$0xff]  ;;  %v6181_v47 = vcombine.low %v299_v45, %v299_v45 }
  0x3e   : > { %6826 = vmatprep.subr.bf16.mxu1 %v7584_v48  ;;  %v6182_v48 = vcombine.high %v299_v45, %v299_v45  ;;  %v7703_v45 = vld [vmem:[%s8186_s12 + $0x450] sm:$0xff]  }
  0x40   : > { %6805 = vmatpush3.bf16.msra.mxu0 %v7585_v49  ;;  %v6183_v49 = vcombine.low %v300_v46, %v300_v46 }
  0x41   : > { %6827 = vmatpush3.bf16.msra.mxu1 %v7586_v50  ;;  %6806 = vmatprep.subr.bf16.mxu0 %v7587_v51  ;;  %v6184_v50 = vcombine.high %v300_v46, %v300_v46  ;;  %v7647_v51 = vld [vmem:[%s8186_s12 + $0x378] sm:$0xff]   ;;  %v7704_v46 = vld [vmem:[%s8186_s12 + $0x4d0] sm:$0xff]  }
  0x42   : > { %6828 = vmatprep.subr.bf16.mxu1 %v7588_v52  ;;  %v7648_v52 = vld [vmem:[%s8186_s12 + $0x3f8] sm:$0xff]  }
  0x44   : > { %6807 = vmatpush3.bf16.msra.mxu0 %v7589_v53  ;;  %v7649_v53 = vld [vmem:[%s8186_s12 + $0x338] sm:$0xff]  }
  0x45   : > { %6829 = vmatpush3.bf16.msra.mxu1 %v7590_v54  ;;  %6808 = vmatprep.subr.bf16.mxu0 %v7591_v55  ;;  %v7650_v54 = vld [vmem:[%s8186_s12 + $0x3b8] sm:$0xff]   ;;  %v7651_v55 = vld [vmem:[%s8186_s12 + $0x370] sm:$0xff]  }
  0x46   : > { %6830 = vmatprep.subr.bf16.mxu1 %v7592_v56  ;;  %v7652_v56 = vld [vmem:[%s8186_s12 + $0x3f0] sm:$0xff]  }
  0x48   : > { %6809 = vmatpush3.bf16.msra.mxu0 %v7593_v57  ;;  %v7653_v57 = vld [vmem:[%s8186_s12 + $0x330] sm:$0xff]  }
  0x49   : > { %6831 = vmatpush3.bf16.msra.mxu1 %v7594_v58  ;;  %6810 = vmatprep.subr.bf16.mxu0 %v7595_v59  ;;  %v7654_v58 = vld [vmem:[%s8186_s12 + $0x3b0] sm:$0xff]   ;;  %v7655_v59 = vld [vmem:[%s8186_s12 + $0x368] sm:$0xff]  }
  0x4a   : > { %6832 = vmatprep.subr.bf16.mxu1 %v7596_v60  ;;  %v7656_v60 = vld [vmem:[%s8186_s12 + $0x3e8] sm:$0xff]  }
  0x4c   : > { %6811 = vmatpush3.bf16.msra.mxu0 %v7597_v61  ;;  %v7657_v61 = vld [vmem:[%s8186_s12 + $0x328] sm:$0xff]  }
  0x4d   : > { %6833 = vmatpush3.bf16.msra.mxu1 %v7598_v62  ;;  %6812 = vmatprep.subr.bf16.mxu0 %v7599_v63  ;;  %v7658_v62 = vld [vmem:[%s8186_s12 + $0x3a8] sm:$0xff]   ;;  %v7659_v63 = vld [vmem:[%s8186_s12 + $0x360] sm:$0xff]  }
  0x4e   : > { %6834 = vmatprep.subr.bf16.mxu1 %v7600_v0  ;;  %v7660_v0 = vld [vmem:[%s8186_s12 + $0x3e0] sm:$0xff]  }
  0x50   : > { %6813 = vmatpush3.bf16.msra.mxu0 %v7601_v1  ;;  %v7661_v1 = vld [vmem:[%s8186_s12 + $0x320] sm:$0xff]  }
  0x51   : > { %6835 = vmatpush3.bf16.msra.mxu1 %v7602_v2  ;;  %6814 = vmatprep.subr.bf16.mxu0 %v7603_v3  ;;  %v7662_v2 = vld [vmem:[%s8186_s12 + $0x3a0] sm:$0xff]   ;;  %v7663_v3 = vld [vmem:[%s8186_s12 + $0x358] sm:$0xff]  }
  0x52   : > { %6836 = vmatprep.subr.bf16.mxu1 %v7604_v4  ;;  %v7664_v4 = vld [vmem:[%s8186_s12 + $0x3d8] sm:$0xff]  }
  0x54   : > { %6815 = vmatpush3.bf16.msra.mxu0 %v7605_v5  ;;  %v7665_v5 = vld [vmem:[%s8186_s12 + $0x318] sm:$0xff]  }
  0x55   : > { %6837 = vmatpush3.bf16.msra.mxu1 %v7606_v6  ;;  %6844 = vmatprep.subr.bf16.mxu0 %v7611_v13  ;;  %v7666_v6 = vld [vmem:[%s8186_s12 + $0x398] sm:$0xff]   ;;  %v7673_v13 = vld [vmem:[%s8186_s12 + $0x308] sm:$0xff]  }
  0x56   : > { %6866 = vmatprep.subr.bf16.mxu1 %v7612_v14  ;;  %v7674_v14 = vld [vmem:[%s8186_s12 + $0x388] sm:$0xff]  }
  0x57   : > { %4760 = vmatmul.mubr.bf16.vlgmr.msra.gmra.mxu0 %v6177_v8  ;;  %v7668_v8 = vld [vmem:[%s8186_s12 + $0x3d0] sm:$0xff]  }
  0x58   : > { %4800 = vmatmul.mubr.bf16.vlgmr.msra.gmra.mxu1 %v6179_v11  ;;  %6845 = vmatpush3.bf16.msra.mxu0 %v7613_v15  ;;  %v7671_v11 = vld [vmem:[%s8186_s12 + $0x348] sm:$0xff]   ;;  %v7675_v15 = vld [vmem:[%s8186_s12 + $0x340] sm:$0xff]  }
  0x59   : > { %6867 = vmatpush3.bf16.msra.mxu1 %v7614_v16  ;;  %6846 = vmatprep.subr.bf16.mxu0 %v7615_v17  ;;  %v7676_v16 = vld [vmem:[%s8186_s12 + $0x3c0] sm:$0xff]  }
  0x5a   : > { %6868 = vmatprep.subr.bf16.mxu1 %v7616_v18  ;;  %4839 = vmatprep.mubr.bf16.mxu0 %v6182_v48  ;;  %v7677_v17 = vld [vmem:[%s8186_s12 + $0x300] sm:$0xff]   ;;  %v7706_v48 = vld [vmem:[%s8186_s12 + $0x490] sm:$0xff]  }
  0x5b   : > { %4879 = vmatprep.mubr.bf16.mxu1 %v6184_v50  ;;  %v7678_v18 = vld [vmem:[%s8186_s12 + $0x380] sm:$0xff]   ;;  %v7708_v50 = vld [vmem:[%s8186_s12 + $0x4c8] sm:$0xff]  }
  0x5c   : > { %6847 = vmatpush3.bf16.msra.mxu0 %v7617_v19  ;;  %v301_v19 = vld [vmem:[%s8181_s8 + $0x30] sm:$0xff] }
  0x5d   : > { %6869 = vmatpush3.bf16.msra.mxu1 %v7618_v20  ;;  %6848 = vmatprep.subr.bf16.mxu0 %v7619_v21  ;;  %v302_v20 = vld [vmem:[%s8181_s8 + $0x38] sm:$0xff]  ;;  %v6185_v21 = vcombine.low %v301_v19, %v301_v19 }
  0x5e   : > { %6870 = vmatprep.subr.bf16.mxu1 %v7620_v22  ;;  %v6186_v22 = vcombine.high %v301_v19, %v301_v19  ;;  %v7739_v19 = vld [vmem:[%s8186_s12 + $0x550] sm:$0xff]  }
  0x60   : > { %6849 = vmatpush3.bf16.msra.mxu0 %v7621_v23  ;;  %v6187_v23 = vcombine.low %v302_v20, %v302_v20 }
  0x61   : > { %6871 = vmatpush3.bf16.msra.mxu1 %v7622_v24  ;;  %6850 = vmatprep.subr.bf16.mxu0 %v7623_v25  ;;  %v7683_v24 = vld [vmem:[%s8186_s12 + $0x478] sm:$0xff]   ;;  %v6188_v25 = vcombine.high %v302_v20, %v302_v20  ;;  %v7740_v20 = vld [vmem:[%s8186_s12 + $0x5d0] sm:$0xff]  }
  0x62   : > { %6872 = vmatprep.subr.bf16.mxu1 %v7624_v26  ;;  %v7684_v26 = vld [vmem:[%s8186_s12 + $0x4f8] sm:$0xff]  }
  0x64   : > { %6851 = vmatpush3.bf16.msra.mxu0 %v7625_v27  ;;  %v7685_v27 = vld [vmem:[%s8186_s12 + $0x438] sm:$0xff]  }
  0x65   : > { %6873 = vmatpush3.bf16.msra.mxu1 %v7626_v28  ;;  %6852 = vmatprep.subr.bf16.mxu0 %v7627_v29  ;;  %v7686_v28 = vld [vmem:[%s8186_s12 + $0x4b8] sm:$0xff]   ;;  %v7687_v29 = vld [vmem:[%s8186_s12 + $0x470] sm:$0xff]  }
  0x66   : > { %6874 = vmatprep.subr.bf16.mxu1 %v7628_v30  ;;  %v7688_v30 = vld [vmem:[%s8186_s12 + $0x4f0] sm:$0xff]  }
  0x68   : > { %6853 = vmatpush3.bf16.msra.mxu0 %v7629_v31  ;;  %v7689_v31 = vld [vmem:[%s8186_s12 + $0x430] sm:$0xff]  }
  0x69   : > { %6875 = vmatpush3.bf16.msra.mxu1 %v7630_v32  ;;  %6854 = vmatprep.subr.bf16.mxu0 %v7631_v33  ;;  %v7690_v32 = vld [vmem:[%s8186_s12 + $0x4b0] sm:$0xff]   ;;  %v7691_v33 = vld [vmem:[%s8186_s12 + $0x468] sm:$0xff]  }
  0x6a   : > { %6876 = vmatprep.subr.bf16.mxu1 %v7632_v34  ;;  %v7692_v34 = vld [vmem:[%s8186_s12 + $0x4e8] sm:$0xff]  }
  0x6c   : > { %6855 = vmatpush3.bf16.msra.mxu0 %v7633_v35  ;;  %v7693_v35 = vld [vmem:[%s8186_s12 + $0x428] sm:$0xff]  }
  0x6d   : > { %6877 = vmatpush3.bf16.msra.mxu1 %v7634_v36  ;;  %6856 = vmatprep.subr.bf16.mxu0 %v7635_v37  ;;  %v7694_v36 = vld [vmem:[%s8186_s12 + $0x4a8] sm:$0xff]   ;;  %v7695_v37 = vld [vmem:[%s8186_s12 + $0x460] sm:$0xff]  }
  0x6e   : > { %6878 = vmatprep.subr.bf16.mxu1 %v7636_v38  ;;  %v7696_v38 = vld [vmem:[%s8186_s12 + $0x4e0] sm:$0xff]  }
  0x70   : > { %6857 = vmatpush3.bf16.msra.mxu0 %v7637_v39  ;;  %v7697_v39 = vld [vmem:[%s8186_s12 + $0x420] sm:$0xff]  }
  0x71   : > { %6879 = vmatpush3.bf16.msra.mxu1 %v7638_v40  ;;  %6858 = vmatprep.subr.bf16.mxu0 %v7639_v41  ;;  %v7698_v40 = vld [vmem:[%s8186_s12 + $0x4a0] sm:$0xff]   ;;  %v7699_v41 = vld [vmem:[%s8186_s12 + $0x458] sm:$0xff]  }
  0x72   : > { %6880 = vmatprep.subr.bf16.mxu1 %v7640_v42  ;;  %v7700_v42 = vld [vmem:[%s8186_s12 + $0x4d8] sm:$0xff]  }
  0x74   : > { %6859 = vmatpush3.bf16.msra.mxu0 %v7641_v43  ;;  %v7701_v43 = vld [vmem:[%s8186_s12 + $0x418] sm:$0xff]  }
  0x75   : > { %6881 = vmatpush3.bf16.msra.mxu1 %v7642_v44  ;;  %6888 = vmatprep.subr.bf16.mxu0 %v7647_v51  ;;  %v7702_v44 = vld [vmem:[%s8186_s12 + $0x498] sm:$0xff]   ;;  %v7709_v51 = vld [vmem:[%s8186_s12 + $0x408] sm:$0xff]  }
  0x76   : > { %6910 = vmatprep.subr.bf16.mxu1 %v7648_v52  ;;  %v7710_v52 = vld [vmem:[%s8186_s12 + $0x488] sm:$0xff]  }
  0x77   : > { %4840 = vmatmul.mubr.bf16.vlgmr.msra.gmra.mxu0 %v6181_v47  ;;  %v7705_v47 = vld [vmem:[%s8186_s12 + $0x410] sm:$0xff]  }
  0x78   : > { %4880 = vmatmul.mubr.bf16.vlgmr.msra.gmra.mxu1 %v6183_v49  ;;  %6889 = vmatpush3.bf16.msra.mxu0 %v7649_v53  ;;  %v7707_v49 = vld [vmem:[%s8186_s12 + $0x448] sm:$0xff]   ;;  %v7711_v53 = vld [vmem:[%s8186_s12 + $0x440] sm:$0xff]  }
  0x79   : > { %6911 = vmatpush3.bf16.msra.mxu1 %v7650_v54  ;;  %6890 = vmatprep.subr.bf16.mxu0 %v7651_v55  ;;  %v7712_v54 = vld [vmem:[%s8186_s12 + $0x4c0] sm:$0xff]  }
  0x7a   : > { %6912 = vmatprep.subr.bf16.mxu1 %v7652_v56  ;;  %4919 = vmatprep.mubr.bf16.mxu0 %v6186_v22  ;;  %v7713_v55 = vld [vmem:[%s8186_s12 + $0x400] sm:$0xff]   ;;  %v7742_v22 = vld [vmem:[%s8186_s12 + $0x590] sm:$0xff]  }
  0x7b   : > { %4959 = vmatprep.mubr.bf16.mxu1 %v6188_v25  ;;  %v7714_v56 = vld [vmem:[%s8186_s12 + $0x480] sm:$0xff]   ;;  %v7745_v25 = vld [vmem:[%s8186_s12 + $0x508] sm:$0xff]  }
  0x7c   : > { %6891 = vmatpush3.bf16.msra.mxu0 %v7653_v57  ;;  %v303_v57 = vld [vmem:[%s8181_s8 + $0x40] sm:$0xff] }
  0x7d   : > { %6913 = vmatpush3.bf16.msra.mxu1 %v7654_v58  ;;  %6892 = vmatprep.subr.bf16.mxu0 %v7655_v59  ;;  %v6189_v58 = vcombine.low %v303_v57, %v303_v57  ;;  %v6190_v59 = vcombine.high %v303_v57, %v303_v57  ;;  %v7775_v57 = vld [vmem:[%s8186_s12 + $0x650] sm:$0xff]  }
  0x7e   : > { %6914 = vmatprep.subr.bf16.mxu1 %v7656_v60  ;;  %v304_v60 = vld [vmem:[%s8181_s8 + $0x48] sm:$0xff] }
  0x80   : > { %6893 = vmatpush3.bf16.msra.mxu0 %v7657_v61  ;;  %v6191_v61 = vcombine.low %v304_v60, %v304_v60 }
  0x81   : > { %6915 = vmatpush3.bf16.msra.mxu1 %v7658_v62  ;;  %6894 = vmatprep.subr.bf16.mxu0 %v7659_v63  ;;  %v6192_v62 = vcombine.high %v304_v60, %v304_v60  ;;  %v7719_v63 = vld [vmem:[%s8186_s12 + $0x578] sm:$0xff]   ;;  %v7778_v60 = vld [vmem:[%s8186_s12 + $0x690] sm:$0xff]  }
  0x82   : > { %6916 = vmatprep.subr.bf16.mxu1 %v7660_v0  ;;  %v7720_v0 = vld [vmem:[%s8186_s12 + $0x5f8] sm:$0xff]  }
  0x84   : > { %6895 = vmatpush3.bf16.msra.mxu0 %v7661_v1  ;;  %v7721_v1 = vld [vmem:[%s8186_s12 + $0x538] sm:$0xff]  }
  0x85   : > { %6917 = vmatpush3.bf16.msra.mxu1 %v7662_v2  ;;  %6896 = vmatprep.subr.bf16.mxu0 %v7663_v3  ;;  %v7722_v2 = vld [vmem:[%s8186_s12 + $0x5b8] sm:$0xff]   ;;  %v7723_v3 = vld [vmem:[%s8186_s12 + $0x570] sm:$0xff]  }
  0x86   : > { %6918 = vmatprep.subr.bf16.mxu1 %v7664_v4  ;;  %v7724_v4 = vld [vmem:[%s8186_s12 + $0x5f0] sm:$0xff]  }
  0x88   : > { %6897 = vmatpush3.bf16.msra.mxu0 %v7665_v5  ;;  %v7725_v5 = vld [vmem:[%s8186_s12 + $0x530] sm:$0xff]  }
  0x89   : > { %6919 = vmatpush3.bf16.msra.mxu1 %v7666_v6  ;;  %6898 = vmatprep.subr.bf16.mxu0 %v7667_v7  ;;  %v7726_v6 = vld [vmem:[%s8186_s12 + $0x5b0] sm:$0xff]   ;;  %v7727_v7 = vld [vmem:[%s8186_s12 + $0x568] sm:$0xff]  }
  0x8a   : > { %6920 = vmatprep.subr.bf16.mxu1 %v7668_v8  ;;  %v7728_v8 = vld [vmem:[%s8186_s12 + $0x5e8] sm:$0xff]  }
  0x8c   : > { %6899 = vmatpush3.bf16.msra.mxu0 %v7669_v9  ;;  %v7729_v9 = vld [vmem:[%s8186_s12 + $0x528] sm:$0xff]  }
  0x8d   : > { %6921 = vmatpush3.bf16.msra.mxu1 %v7670_v10  ;;  %6900 = vmatprep.subr.bf16.mxu0 %v7671_v11  ;;  %v7730_v10 = vld [vmem:[%s8186_s12 + $0x5a8] sm:$0xff]   ;;  %v7731_v11 = vld [vmem:[%s8186_s12 + $0x560] sm:$0xff]  }
  0x8e   : > { %6922 = vmatprep.subr.bf16.mxu1 %v7672_v12  ;;  %v7732_v12 = vld [vmem:[%s8186_s12 + $0x5e0] sm:$0xff]  }
  0x90   : > { %6901 = vmatpush3.bf16.msra.mxu0 %v7673_v13  ;;  %v7733_v13 = vld [vmem:[%s8186_s12 + $0x520] sm:$0xff]  }
  0x91   : > { %6923 = vmatpush3.bf16.msra.mxu1 %v7674_v14  ;;  %6902 = vmatprep.subr.bf16.mxu0 %v7675_v15  ;;  %v7734_v14 = vld [vmem:[%s8186_s12 + $0x5a0] sm:$0xff]   ;;  %v7735_v15 = vld [vmem:[%s8186_s12 + $0x558] sm:$0xff]  }
  0x92   : > { %6924 = vmatprep.subr.bf16.mxu1 %v7676_v16  ;;  %v7736_v16 = vld [vmem:[%s8186_s12 + $0x5d8] sm:$0xff]  }
  0x94   : > { %6903 = vmatpush3.bf16.msra.mxu0 %v7677_v17  ;;  %v7737_v17 = vld [vmem:[%s8186_s12 + $0x518] sm:$0xff]  }
  0x95   : > { %6925 = vmatpush3.bf16.msra.mxu1 %v7678_v18  ;;  %6932 = vmatprep.subr.bf16.mxu0 %v7683_v24  ;;  %v7738_v18 = vld [vmem:[%s8186_s12 + $0x598] sm:$0xff]   ;;  %v7744_v24 = vld [vmem:[%s8186_s12 + $0x5c8] sm:$0xff]  }
  0x96   : > { %6954 = vmatprep.subr.bf16.mxu1 %v7684_v26  ;;  %v7746_v26 = vld [vmem:[%s8186_s12 + $0x588] sm:$0xff]  }
  0x97   : > { %4920 = vmatmul.mubr.bf16.vlgmr.msra.gmra.mxu0 %v6185_v21  ;;  %v7741_v21 = vld [vmem:[%s8186_s12 + $0x510] sm:$0xff]  }
  0x98   : > { %4960 = vmatmul.mubr.bf16.vlgmr.msra.gmra.mxu1 %v6187_v23  ;;  %6933 = vmatpush3.bf16.msra.mxu0 %v7685_v27  ;;  %v7743_v23 = vld [vmem:[%s8186_s12 + $0x548] sm:$0xff]   ;;  %v7747_v27 = vld [vmem:[%s8186_s12 + $0x540] sm:$0xff]  }
  0x99   : > { %6955 = vmatpush3.bf16.msra.mxu1 %v7686_v28  ;;  %6934 = vmatprep.subr.bf16.mxu0 %v7687_v29  ;;  %v7748_v28 = vld [vmem:[%s8186_s12 + $0x5c0] sm:$0xff]  }
  0x9a   : > { %6956 = vmatprep.subr.bf16.mxu1 %v7688_v30  ;;  %4999 = vmatprep.mubr.bf16.mxu0 %v6190_v59  ;;  %v7749_v29 = vld [vmem:[%s8186_s12 + $0x500] sm:$0xff]   ;;  %v7777_v59 = vld [vmem:[%s8186_s12 + $0x610] sm:$0xff]  }
  0x9b   : > { %5039 = vmatprep.mubr.bf16.mxu1 %v6192_v62  ;;  %v7750_v30 = vld [vmem:[%s8186_s12 + $0x580] sm:$0xff]   ;;  %v7780_v62 = vld [vmem:[%s8186_s12 + $0x6c8] sm:$0xff]  }
  0x9c   : > { %6935 = vmatpush3.bf16.msra.mxu0 %v7689_v31  ;;  %v305_v31 = vld [vmem:[%s8181_s8 + $0x50] sm:$0xff] }
  0x9d   : > { %6957 = vmatpush3.bf16.msra.mxu1 %v7690_v32  ;;  %6936 = vmatprep.subr.bf16.mxu0 %v7691_v33  ;;  %v306_v32 = vld [vmem:[%s8181_s8 + $0x58] sm:$0xff]  ;;  %v6193_v33 = vcombine.low %v305_v31, %v305_v31 }
  0x9e   : > { %6958 = vmatprep.subr.bf16.mxu1 %v7692_v34  ;;  %v6194_v34 = vcombine.high %v305_v31, %v305_v31  ;;  %v7800_v31 = vld [vmem:[%s8186_s12 + $0x7e8] sm:$0xff]  }
  0xa0   : > { %6937 = vmatpush3.bf16.msra.mxu0 %v7693_v35  ;;  %v6195_v35 = vcombine.low %v306_v32, %v306_v32 }
  0xa1   : > { %6959 = vmatpush3.bf16.msra.mxu1 %v7694_v36  ;;  %6938 = vmatprep.subr.bf16.mxu0 %v7695_v37  ;;  %v6196_v36 = vcombine.high %v306_v32, %v306_v32  ;;  %v7755_v37 = vld [vmem:[%s8186_s12 + $0x678] sm:$0xff]   ;;  %v7801_v32 = vld [vmem:[%s8186_s12 + $0x728] sm:$0xff]  }
  0xa2   : > { %6960 = vmatprep.subr.bf16.mxu1 %v7696_v38  ;;  %v7756_v38 = vld [vmem:[%s8186_s12 + $0x6f8] sm:$0xff]  }
  0xa4   : > { %6939 = vmatpush3.bf16.msra.mxu0 %v7697_v39  ;;  %v7757_v39 = vld [vmem:[%s8186_s12 + $0x638] sm:$0xff]  }
  0xa5   : > { %6961 = vmatpush3.bf16.msra.mxu1 %v7698_v40  ;;  %6940 = vmatprep.subr.bf16.mxu0 %v7699_v41  ;;  %v7758_v40 = vld [vmem:[%s8186_s12 + $0x6b8] sm:$0xff]   ;;  %v7759_v41 = vld [vmem:[%s8186_s12 + $0x670] sm:$0xff]  }
  0xa6   : > { %6962 = vmatprep.subr.bf16.mxu1 %v7700_v42  ;;  %v7760_v42 = vld [vmem:[%s8186_s12 + $0x6f0] sm:$0xff]  }
  0xa8   : > { %6941 = vmatpush3.bf16.msra.mxu0 %v7701_v43  ;;  %v7761_v43 = vld [vmem:[%s8186_s12 + $0x630] sm:$0xff]  }
  0xa9   : > { %6963 = vmatpush3.bf16.msra.mxu1 %v7702_v44  ;;  %6942 = vmatprep.subr.bf16.mxu0 %v7703_v45  ;;  %v7762_v44 = vld [vmem:[%s8186_s12 + $0x6b0] sm:$0xff]   ;;  %v7763_v45 = vld [vmem:[%s8186_s12 + $0x668] sm:$0xff]  }
  0xaa   : > { %6964 = vmatprep.subr.bf16.mxu1 %v7704_v46  ;;  %v7764_v46 = vld [vmem:[%s8186_s12 + $0x6e8] sm:$0xff]  }
  0xac   : > { %6943 = vmatpush3.bf16.msra.mxu0 %v7705_v47  ;;  %v7765_v47 = vld [vmem:[%s8186_s12 + $0x628] sm:$0xff]  }
  0xad   : > { %6965 = vmatpush3.bf16.msra.mxu1 %v7706_v48  ;;  %6944 = vmatprep.subr.bf16.mxu0 %v7707_v49  ;;  %v7766_v48 = vld [vmem:[%s8186_s12 + $0x6a8] sm:$0xff]   ;;  %v7767_v49 = vld [vmem:[%s8186_s12 + $0x660] sm:$0xff]  }
  0xae   : > { %6966 = vmatprep.subr.bf16.mxu1 %v7708_v50  ;;  %v7768_v50 = vld [vmem:[%s8186_s12 + $0x6e0] sm:$0xff]  }
  0xb0   : > { %6945 = vmatpush3.bf16.msra.mxu0 %v7709_v51  ;;  %v7769_v51 = vld [vmem:[%s8186_s12 + $0x620] sm:$0xff]  }
  0xb1   : > { %6967 = vmatpush3.bf16.msra.mxu1 %v7710_v52  ;;  %6946 = vmatprep.subr.bf16.mxu0 %v7711_v53  ;;  %v7770_v52 = vld [vmem:[%s8186_s12 + $0x6a0] sm:$0xff]   ;;  %v7771_v53 = vld [vmem:[%s8186_s12 + $0x658] sm:$0xff]  }
  0xb2   : > { %6968 = vmatprep.subr.bf16.mxu1 %v7712_v54  ;;  %v7772_v54 = vld [vmem:[%s8186_s12 + $0x6d8] sm:$0xff]  }
  0xb4   : > { %6947 = vmatpush3.bf16.msra.mxu0 %v7713_v55  ;;  %v7773_v55 = vld [vmem:[%s8186_s12 + $0x618] sm:$0xff]  }
  0xb5   : > { %6969 = vmatpush3.bf16.msra.mxu1 %v7714_v56  ;;  %6976 = vmatprep.subr.bf16.mxu0 %v7719_v63  ;;  %v7774_v56 = vld [vmem:[%s8186_s12 + $0x698] sm:$0xff]   ;;  %v7781_v63 = vld [vmem:[%s8186_s12 + $0x608] sm:$0xff]  }
  0xb6   : > { %6998 = vmatprep.subr.bf16.mxu1 %v7720_v0  ;;  %v7782_v0 = vld [vmem:[%s8186_s12 + $0x688] sm:$0xff]  }
  0xb7   : > { %5000 = vmatmul.mubr.bf16.vlgmr.msra.gmra.mxu0 %v6189_v58  ;;  %v7776_v58 = vld [vmem:[%s8186_s12 + $0x6d0] sm:$0xff]  }
  0xb8   : > { %5040 = vmatmul.mubr.bf16.vlgmr.msra.gmra.mxu1 %v6191_v61  ;;  %6977 = vmatpush3.bf16.msra.mxu0 %v7721_v1  ;;  %v7779_v61 = vld [vmem:[%s8186_s12 + $0x648] sm:$0xff]   ;;  %v7783_v1 = vld [vmem:[%s8186_s12 + $0x640] sm:$0xff]  }
  0xb9   : > { %6999 = vmatpush3.bf16.msra.mxu1 %v7722_v2  ;;  %6978 = vmatprep.subr.bf16.mxu0 %v7723_v3  ;;  %v7784_v2 = vld [vmem:[%s8186_s12 + $0x6c0] sm:$0xff]  }
  0xba   : > { %7000 = vmatprep.subr.bf16.mxu1 %v7724_v4  ;;  %5079 = vmatprep.mubr.bf16.mxu0 %v6194_v34  ;;  %v7785_v3 = vld [vmem:[%s8186_s12 + $0x600] sm:$0xff]  }
  0xbb   : > { %5119 = vmatprep.mubr.bf16.mxu1 %v6196_v36  ;;  %v7786_v4 = vld [vmem:[%s8186_s12 + $0x680] sm:$0xff]  }
  0xbc   : > { %6979 = vmatpush3.bf16.msra.mxu0 %v7725_v5  ;;  %v307_v5 = vld [vmem:[%s8181_s8 + $0x60] sm:$0xff] }
  0xbd   : > { %7001 = vmatpush3.bf16.msra.mxu1 %v7726_v6  ;;  %6980 = vmatprep.subr.bf16.mxu0 %v7727_v7  ;;  %v308_v6 = vld [vmem:[%s8181_s8 + $0x68] sm:$0xff]  ;;  %v7803_v34 = vld [vmem:[%s8186_s12 + $0x760] sm:$0xff]  }
  0xbe   : > { %7002 = vmatprep.subr.bf16.mxu1 %v7728_v8  ;;  %v7805_v36 = vld [vmem:[%s8186_s12 + $0x720] sm:$0xff]  }
  0xc0   : > { %6981 = vmatpush3.bf16.msra.mxu0 %v7729_v9  ;;  %v6197_v9 = vcombine.low %v307_v5, %v307_v5 }
  0xc1   : > { %7003 = vmatpush3.bf16.msra.mxu1 %v7730_v10  ;;  %6982 = vmatprep.subr.bf16.mxu0 %v7731_v11  ;;  %v6198_v10 = vcombine.high %v307_v5, %v307_v5  ;;  %v6199_v11 = vcombine.low %v308_v6, %v308_v6  ;;  %v7830_v5 = vld [vmem:[%s8186_s12 + $0x8b8] sm:$0xff]  }
  0xc2   : > { %7004 = vmatprep.subr.bf16.mxu1 %v7732_v12  ;;  %v7791_v12 = vld [vmem:[%s8186_s12 + $0x778] sm:$0xff]  }
  0xc4   : > { %6983 = vmatpush3.bf16.msra.mxu0 %v7733_v13  ;;  %v6200_v13 = vcombine.high %v308_v6, %v308_v6 }
  0xc5   : > { %7005 = vmatpush3.bf16.msra.mxu1 %v7734_v14  ;;  %6984 = vmatprep.subr.bf16.mxu0 %v7735_v15  ;;  %v7792_v14 = vld [vmem:[%s8186_s12 + $0x7f8] sm:$0xff]  }
  0xc6   : > { %7006 = vmatprep.subr.bf16.mxu1 %v7736_v16 }
  0xc8   : > { %6985 = vmatpush3.bf16.msra.mxu0 %v7737_v17  ;;  %v7793_v17 = vld [vmem:[%s8186_s12 + $0x738] sm:$0xff]  }
  0xc9   : > { %7007 = vmatpush3.bf16.msra.mxu1 %v7738_v18  ;;  %6986 = vmatprep.subr.bf16.mxu0 %v7739_v19 }
  0xca   : > { %7008 = vmatprep.subr.bf16.mxu1 %v7740_v20  ;;  %v7794_v20 = vld [vmem:[%s8186_s12 + $0x7b8] sm:$0xff]  }
  0xcc   : > { %6987 = vmatpush3.bf16.msra.mxu0 %v7741_v21 }
  0xcd   : > { %7009 = vmatpush3.bf16.msra.mxu1 %v7742_v22  ;;  %6988 = vmatprep.subr.bf16.mxu0 %v7743_v23 }
  0xce   : > { %7010 = vmatprep.subr.bf16.mxu1 %v7744_v24  ;;  %v7795_v24 = vld [vmem:[%s8186_s12 + $0x770] sm:$0xff]  }
  0xd0   : > { %6989 = vmatpush3.bf16.msra.mxu0 %v7745_v25  ;;  %v7796_v25 = vld [vmem:[%s8186_s12 + $0x7f0] sm:$0xff]  }
  0xd1   : > { %7011 = vmatpush3.bf16.msra.mxu1 %v7746_v26  ;;  %6990 = vmatprep.subr.bf16.mxu0 %v7747_v27 }
  0xd2   : > { %7012 = vmatprep.subr.bf16.mxu1 %v7748_v28  ;;  %v7797_v28 = vld [vmem:[%s8186_s12 + $0x730] sm:$0xff]  }
  0xd4   : > { %6991 = vmatpush3.bf16.msra.mxu0 %v7749_v29  ;;  %v7798_v29 = vld [vmem:[%s8186_s12 + $0x7b0] sm:$0xff]  }
  0xd5   : > { %7013 = vmatpush3.bf16.msra.mxu1 %v7750_v30  ;;  %7020 = vmatprep.subr.bf16.mxu0 %v7755_v37  ;;  %v7799_v30 = vld [vmem:[%s8186_s12 + $0x768] sm:$0xff]   ;;  %v7806_v37 = vld [vmem:[%s8186_s12 + $0x7a0] sm:$0xff]  }
  0xd6   : > { %7042 = vmatprep.subr.bf16.mxu1 %v7756_v38  ;;  %v7807_v38 = vld [vmem:[%s8186_s12 + $0x758] sm:$0xff]  }
  0xd7   : > { %5080 = vmatmul.mubr.bf16.vlgmr.msra.gmra.mxu0 %v6193_v33  ;;  %v7802_v33 = vld [vmem:[%s8186_s12 + $0x7a8] sm:$0xff]  }
  0xd8   : > { %5120 = vmatmul.mubr.bf16.vlgmr.msra.gmra.mxu1 %v6195_v35  ;;  %7021 = vmatpush3.bf16.msra.mxu0 %v7757_v39  ;;  %v7804_v35 = vld [vmem:[%s8186_s12 + $0x7e0] sm:$0xff]   ;;  %v7808_v39 = vld [vmem:[%s8186_s12 + $0x7d8] sm:$0xff]  }
  0xd9   : > { %7043 = vmatpush3.bf16.msra.mxu1 %v7758_v40  ;;  %7022 = vmatprep.subr.bf16.mxu0 %v7759_v41  ;;  %v7809_v40 = vld [vmem:[%s8186_s12 + $0x718] sm:$0xff]  }
  0xda   : > { %7044 = vmatprep.subr.bf16.mxu1 %v7760_v42  ;;  %5159 = vmatprep.mubr.bf16.mxu0 %v6198_v10  ;;  %v7810_v41 = vld [vmem:[%s8186_s12 + $0x798] sm:$0xff]   ;;  %v7811_v42 = vld [vmem:[%s8186_s12 + $0x750] sm:$0xff]  }
  0xdb   : > { %5199 = vmatprep.mubr.bf16.mxu1 %v6200_v13  ;;  %v7832_v10 = vld [vmem:[%s8186_s12 + $0x8f0] sm:$0xff]  }
  0xdc   : > { %7023 = vmatpush3.bf16.msra.mxu0 %v7761_v43  ;;  %v7812_v43 = vld [vmem:[%s8186_s12 + $0x7d0] sm:$0xff]  }
  0xdd   : > { %7045 = vmatpush3.bf16.msra.mxu1 %v7762_v44  ;;  %7024 = vmatprep.subr.bf16.mxu0 %v7763_v45  ;;  %v7813_v44 = vld [vmem:[%s8186_s12 + $0x710] sm:$0xff]  }
  0xde   : > { %7046 = vmatprep.subr.bf16.mxu1 %v7764_v46  ;;  %v7814_v45 = vld [vmem:[%s8186_s12 + $0x790] sm:$0xff]   ;;  %v7815_v46 = vld [vmem:[%s8186_s12 + $0x748] sm:$0xff]  }
  0xe0   : > { %7025 = vmatpush3.bf16.msra.mxu0 %v7765_v47  ;;  %v7816_v47 = vld [vmem:[%s8186_s12 + $0x7c8] sm:$0xff]  }
  0xe1   : > { %7047 = vmatpush3.bf16.msra.mxu1 %v7766_v48  ;;  %7026 = vmatprep.subr.bf16.mxu0 %v7767_v49  ;;  %v7817_v48 = vld [vmem:[%s8186_s12 + $0x708] sm:$0xff]  }
  0xe2   : > { %7048 = vmatprep.subr.bf16.mxu1 %v7768_v50  ;;  %v7818_v49 = vld [vmem:[%s8186_s12 + $0x788] sm:$0xff]   ;;  %v7819_v50 = vld [vmem:[%s8186_s12 + $0x740] sm:$0xff]  }
  0xe4   : > { %7027 = vmatpush3.bf16.msra.mxu0 %v7769_v51  ;;  %v7820_v51 = vld [vmem:[%s8186_s12 + $0x7c0] sm:$0xff]  }
  0xe5   : > { %7049 = vmatpush3.bf16.msra.mxu1 %v7770_v52  ;;  %7028 = vmatprep.subr.bf16.mxu0 %v7771_v53  ;;  %v7821_v52 = vld [vmem:[%s8186_s12 + $0x700] sm:$0xff]  }
  0xe6   : > { %7050 = vmatprep.subr.bf16.mxu1 %v7772_v54  ;;  %v7822_v53 = vld [vmem:[%s8186_s12 + $0x780] sm:$0xff]   ;;  %v309_v54 = vld [vmem:[%s8181_s8 + $0x70] sm:$0xff] }
  0xe8   : > { %7029 = vmatpush3.bf16.msra.mxu0 %v7773_v55  ;;  %v6201_v55 = vcombine.low %v309_v54, %v309_v54 }
  0xe9   : > { %7051 = vmatpush3.bf16.msra.mxu1 %v7774_v56  ;;  %7030 = vmatprep.subr.bf16.mxu0 %v7775_v57  ;;  %v6202_v56 = vcombine.high %v309_v54, %v309_v54  ;;  %v310_v57 = vld [vmem:[%s8181_s8 + $0x78] sm:$0xff] }
  0xea   : > { %7052 = vmatprep.subr.bf16.mxu1 %v7776_v58  ;;  %v7866_v54 = vld [vmem:[%s8186_s12 + $0x9b8] sm:$0xff]  }
  0xec   : > { %7031 = vmatpush3.bf16.msra.mxu0 %v7777_v59 }
  0xed   : > { %7053 = vmatpush3.bf16.msra.mxu1 %v7778_v60  ;;  %7032 = vmatprep.subr.bf16.mxu0 %v7779_v61  ;;  %v6203_v60 = vcombine.low %v310_v57, %v310_v57  ;;  %v6204_v61 = vcombine.high %v310_v57, %v310_v57 }
  0xee   : > { %7054 = vmatprep.subr.bf16.mxu1 %v7780_v62  ;;  %v7827_v62 = vld [vmem:[%s8186_s12 + $0x878] sm:$0xff]  }
  0xf0   : > { %7033 = vmatpush3.bf16.msra.mxu0 %v7781_v63  ;;  %v7828_v63 = vld [vmem:[%s8186_s12 + $0x8f8] sm:$0xff]  }
  0xf1   : > { %7055 = vmatpush3.bf16.msra.mxu1 %v7782_v0  ;;  %7034 = vmatprep.subr.bf16.mxu0 %v7783_v1 }
  0xf2   : > { %7056 = vmatprep.subr.bf16.mxu1 %v7784_v2  ;;  %v7829_v2 = vld [vmem:[%s8186_s12 + $0x838] sm:$0xff]  }
  0xf4   : > { %7035 = vmatpush3.bf16.msra.mxu0 %v7785_v3 }
  0xf5   : > { %7057 = vmatpush3.bf16.msra.mxu1 %v7786_v4  ;;  %7064 = vmatprep.subr.bf16.mxu0 %v7791_v12 }
  0xf6   : > { %7086 = vmatprep.subr.bf16.mxu1 %v7792_v14  ;;  %v7833_v14 = vld [vmem:[%s8186_s12 + $0x830] sm:$0xff]  }
  0xf7   : > { %v6772_v7 = vpop.f32.mrf.mxu0  ;;  %5160 = vmatmul.mubr.bf16.vlgmr.msra.gmra.mxu0 %v6197_v9  ;;  %v7831_v9 = vld [vmem:[%s8186_s12 + $0x870] sm:$0xff]  }
  0xf8   : > { %v6794_v8 = vpop.f32.mrf.mxu1  ;;  %5200 = vmatmul.mubr.bf16.vlgmr.msra.gmra.mxu1 %v6199_v11  ;;  %7065 = vmatpush3.bf16.msra.mxu0 %v7793_v17  ;;  %v7836_v17 = vld [vmem:[%s8186_s12 + $0x8e8] sm:$0xff]  }
  0xf9   : > { %v6773_v15 = vpop.f32.mrf.mxu0  ;;  %7087 = vmatpush3.bf16.msra.mxu1 %v7794_v20  ;;  %7066 = vmatprep.subr.bf16.mxu0 %v7795_v24  ;;  %v7839_v20 = vld [vmem:[%s8186_s12 + $0x860] sm:$0xff]   ;;  %v7843_v24 = vld [vmem:[%s8186_s12 + $0x858] sm:$0xff]  }
  0xfa   : > { %v6795_v16 = vpop.f32.mrf.mxu1  ;;  %v6774_v18 = vadd.f32 %v6773_v15, %v6772_v7  ;;  %7088 = vmatprep.subr.bf16.mxu1 %v7796_v25  ;;  %5239 = vmatprep.mubr.bf16.mxu0 %v6202_v56  ;;  %v7834_v15 = vld [vmem:[%s8186_s12 + $0x8b0] sm:$0xff]   ;;  %v7844_v25 = vld [vmem:[%s8186_s12 + $0x8d8] sm:$0xff]  }
  0xfb   : > { %v6796_v19 = vadd.f32 %v6795_v16, %v6794_v8  ;;  %v6775_v21 = vpop.f32.mrf.mxu0  ;;  %5279 = vmatprep.mubr.bf16.mxu1 %v6204_v61  ;;  %v7835_v16 = vld [vmem:[%s8186_s12 + $0x868] sm:$0xff]  }
  0xfc   : > { %v6797_v22 = vpop.f32.mrf.mxu1  ;;  %7067 = vmatpush3.bf16.msra.mxu0 %v7797_v28  ;;  %v7840_v21 = vld [vmem:[%s8186_s12 + $0x8e0] sm:$0xff]   ;;  %v7847_v28 = vld [vmem:[%s8186_s12 + $0x850] sm:$0xff]  }
  0xfd   : > { %v8431_v23 = vadd.f32 %v6796_v19, %v6774_v18  ;;  %v6776_v26 = vpop.f32.mrf.mxu0  ;;  %7089 = vmatpush3.bf16.msra.mxu1 %v7798_v29  ;;  %7068 = vmatprep.subr.bf16.mxu0 %v7799_v30  ;;  %v7837_v18 = vld [vmem:[%s8186_s12 + $0x828] sm:$0xff]   ;;  %v7841_v22 = vld [vmem:[%s8186_s12 + $0x820] sm:$0xff]   ;;  %v7848_v29 = vld [vmem:[%s8186_s12 + $0x8d0] sm:$0xff]  }
  0xfe   : > { %v6798_v27 = vpop.f32.mrf.mxu1  ;;  %7090 = vmatprep.subr.bf16.mxu1 %v7800_v31  ;;  %v7838_v19 = vld [vmem:[%s8186_s12 + $0x8a8] sm:$0xff]   ;;  %v7845_v26 = vld [vmem:[%s8186_s12 + $0x818] sm:$0xff]   ;;  %v7849_v30 = vld [vmem:[%s8186_s12 + $0x810] sm:$0xff]  }
  0xff   : > { %v7846_v27 = vld [vmem:[%s8186_s12 + $0x898] sm:$0xff]   ;;  %v7850_v31 = vld [vmem:[%s8186_s12 + $0x890] sm:$0xff]  }
 0x100   : > { %7069 = vmatpush3.bf16.msra.mxu0 %v7801_v32  ;;  %v7851_v32 = vld [vmem:[%s8186_s12 + $0x848] sm:$0xff]  }
 0x101   : > { %7091 = vmatpush3.bf16.msra.mxu1 %v7802_v33  ;;  %7070 = vmatprep.subr.bf16.mxu0 %v7803_v34  ;;  %v7852_v33 = vld [vmem:[%s8186_s12 + $0x8c8] sm:$0xff]  }
 0x102   : > { %7092 = vmatprep.subr.bf16.mxu1 %v7804_v35  ;;  %v7853_v34 = vld [vmem:[%s8186_s12 + $0x808] sm:$0xff]  }
 0x103   : > { %v7854_v35 = vld [vmem:[%s8186_s12 + $0x888] sm:$0xff]  }
 0x104   : > { %7071 = vmatpush3.bf16.msra.mxu0 %v7805_v36  ;;  %v7855_v36 = vld [vmem:[%s8186_s12 + $0x840] sm:$0xff]  }
 0x105   : > { %7093 = vmatpush3.bf16.msra.mxu1 %v7806_v37  ;;  %7072 = vmatprep.subr.bf16.mxu0 %v7807_v38  ;;  %v7856_v37 = vld [vmem:[%s8186_s12 + $0x8c0] sm:$0xff]  }
 0x106   : > { %7094 = vmatprep.subr.bf16.mxu1 %v7808_v39  ;;  %v7857_v38 = vld [vmem:[%s8186_s12 + $0x800] sm:$0xff]  }
 0x107   : > { %v7858_v39 = vld [vmem:[%s8186_s12 + $0x880] sm:$0xff]  }
 0x108   : > { %7073 = vmatpush3.bf16.msra.mxu0 %v7809_v40  ;;  %v311_v40 = vld [vmem:[%s8181_s8 + $0x80] sm:$0xff] }
 0x109   : > { %7095 = vmatpush3.bf16.msra.mxu1 %v7810_v41  ;;  %7074 = vmatprep.subr.bf16.mxu0 %v7811_v42  ;;  %v312_v41 = vld [vmem:[%s8181_s8 + $0x88] sm:$0xff] }
 0x10a   : > { %7096 = vmatprep.subr.bf16.mxu1 %v7812_v43  ;;  %v6205_v43 = vcombine.low %v311_v40, %v311_v40 }
 0x10c   : > { %7075 = vmatpush3.bf16.msra.mxu0 %v7813_v44  ;;  %v6206_v44 = vcombine.high %v311_v40, %v311_v40  ;;  %v7902_v40 = vld [vmem:[%s8186_s12 + $0xab8] sm:$0xff]  }
 0x10d   : > { %7097 = vmatpush3.bf16.msra.mxu1 %v7814_v45  ;;  %7076 = vmatprep.subr.bf16.mxu0 %v7815_v46  ;;  %v6207_v45 = vcombine.low %v312_v41, %v312_v41  ;;  %v6208_v46 = vcombine.high %v312_v41, %v312_v41 }
 0x10e   : > { %7098 = vmatprep.subr.bf16.mxu1 %v7816_v47 }
 0x110   : > { %7077 = vmatpush3.bf16.msra.mxu0 %v7817_v48  ;;  %v7863_v48 = vld [vmem:[%s8186_s12 + $0x978] sm:$0xff]  }
 0x111   : > { %7099 = vmatpush3.bf16.msra.mxu1 %v7818_v49  ;;  %7078 = vmatprep.subr.bf16.mxu0 %v7819_v50  ;;  %v7864_v49 = vld [vmem:[%s8186_s12 + $0x9f8] sm:$0xff]  }
 0x112   : > { %7100 = vmatprep.subr.bf16.mxu1 %v7820_v51  ;;  %v7865_v51 = vld [vmem:[%s8186_s12 + $0x938] sm:$0xff]  }
 0x114   : > { %7079 = vmatpush3.bf16.msra.mxu0 %v7821_v52 }
 0x115   : > { %7101 = vmatpush3.bf16.msra.mxu1 %v7822_v53  ;;  %7108 = vmatprep.subr.bf16.mxu0 %v7827_v62 }
 0x116   : > { %7130 = vmatprep.subr.bf16.mxu1 %v7828_v63  ;;  %v7869_v63 = vld [vmem:[%s8186_s12 + $0x930] sm:$0xff]  }
 0x117   : > { %v6816_v58 = vpop.f32.mrf.mxu0  ;;  %5240 = vmatmul.mubr.bf16.vlgmr.msra.gmra.mxu0 %v6201_v55 }
 0x118   : > { %v6838_v59 = vpop.f32.mrf.mxu1  ;;  %5280 = vmatmul.mubr.bf16.vlgmr.msra.gmra.mxu1 %v6203_v60  ;;  %7109 = vmatpush3.bf16.msra.mxu0 %v7829_v2  ;;  %v7868_v60 = vld [vmem:[%s8186_s12 + $0x9f0] sm:$0xff]   ;;  %v7871_v2 = vld [vmem:[%s8186_s12 + $0x968] sm:$0xff]  }
 0x119   : > { %v6817_v0 = vpop.f32.mrf.mxu0  ;;  %7131 = vmatpush3.bf16.msra.mxu1 %v7830_v5  ;;  %7110 = vmatprep.subr.bf16.mxu0 %v7831_v9  ;;  %v7874_v5 = vld [vmem:[%s8186_s12 + $0x9a8] sm:$0xff]   ;;  %v7878_v9 = vld [vmem:[%s8186_s12 + $0x9a0] sm:$0xff]  }
 0x11a   : > { %v6839_v1 = vpop.f32.mrf.mxu1  ;;  %v6818_v3 = vadd.f32 %v6817_v0, %v6816_v58  ;;  %7132 = vmatprep.subr.bf16.mxu1 %v7832_v10  ;;  %5319 = vmatprep.mubr.bf16.mxu0 %v6206_v44  ;;  %v7879_v10 = vld [vmem:[%s8186_s12 + $0x958] sm:$0xff]  }
 0x11b   : > { %v6840_v4 = vadd.f32 %v6839_v1, %v6838_v59  ;;  %v6819_v6 = vpop.f32.mrf.mxu0  ;;  %5359 = vmatprep.mubr.bf16.mxu1 %v6208_v46  ;;  %v7867_v59 = vld [vmem:[%s8186_s12 + $0x970] sm:$0xff]  }
 0x11c   : > { %v6841_v7 = vpop.f32.mrf.mxu1  ;;  %v4762_v8 = vadd.f32 %v6818_v3, %v8431_v23  ;;  %7111 = vmatpush3.bf16.msra.mxu0 %v7833_v14  ;;  %v7842_v23 = vld [vmem:[%s8186_s12 + $0x8a0] sm:$0xff]   ;;  %v7870_v1 = vld [vmem:[%s8186_s12 + $0x9b0] sm:$0xff]   ;;  %v7872_v3 = vld [vmem:[%s8186_s12 + $0x9e8] sm:$0xff]  }
 0x11d   : > { %v6820_v11 = vpop.f32.mrf.mxu0  ;;  %7133 = vmatpush3.bf16.msra.mxu1 %v7834_v15  ;;  %7112 = vmatprep.subr.bf16.mxu0 %v7835_v16  ;;  %v7875_v6 = vld [vmem:[%s8186_s12 + $0x960] sm:$0xff]   ;;  %v7883_v14 = vld [vmem:[%s8186_s12 + $0x950] sm:$0xff]  }
 0x11e   : > { %v6842_v12 = vpop.f32.mrf.mxu1  ;;  %v8470_v13 = vadd.f32 %v6840_v4, %v4762_v8  ;;  %7134 = vmatprep.subr.bf16.mxu1 %v7836_v17  ;;  %v7873_v4 = vld [vmem:[%s8186_s12 + $0x928] sm:$0xff]   ;;  %v7876_v7 = vld [vmem:[%s8186_s12 + $0x9e0] sm:$0xff]   ;;  %v7880_v11 = vld [vmem:[%s8186_s12 + $0x9d8] sm:$0xff]  }
 0x11f   : > { %v7877_v8 = vld [vmem:[%s8186_s12 + $0x920] sm:$0xff]   ;;  %v7881_v12 = vld [vmem:[%s8186_s12 + $0x918] sm:$0xff]   ;;  %v7884_v15 = vld [vmem:[%s8186_s12 + $0x9d0] sm:$0xff]  }
 0x120   : > { %7113 = vmatpush3.bf16.msra.mxu0 %v7837_v18  ;;  %v7885_v16 = vld [vmem:[%s8186_s12 + $0x910] sm:$0xff]   ;;  %v7887_v18 = vld [vmem:[%s8186_s12 + $0x948] sm:$0xff]  }
 0x121   : > { %7135 = vmatpush3.bf16.msra.mxu1 %v7838_v19  ;;  %7114 = vmatprep.subr.bf16.mxu0 %v7839_v20  ;;  %v7886_v17 = vld [vmem:[%s8186_s12 + $0x990] sm:$0xff]   ;;  %v7888_v19 = vld [vmem:[%s8186_s12 + $0x9c8] sm:$0xff]  }
 0x122   : > { %7136 = vmatprep.subr.bf16.mxu1 %v7840_v21  ;;  %v7889_v20 = vld [vmem:[%s8186_s12 + $0x908] sm:$0xff]   ;;  %v7904_v46 = vld [vmem:[%s8186_s12 + $0xaf0] sm:$0xff]  }
 0x123   : > { %v7890_v21 = vld [vmem:[%s8186_s12 + $0x988] sm:$0xff]  }
 0x124   : > { %7115 = vmatpush3.bf16.msra.mxu0 %v7841_v22  ;;  %v7891_v22 = vld [vmem:[%s8186_s12 + $0x940] sm:$0xff]  }
 0x125   : > { %7137 = vmatpush3.bf16.msra.mxu1 %v7842_v23  ;;  %7116 = vmatprep.subr.bf16.mxu0 %v7843_v24  ;;  %v7892_v23 = vld [vmem:[%s8186_s12 + $0x9c0] sm:$0xff]  }
 0x126   : > { %7138 = vmatprep.subr.bf16.mxu1 %v7844_v25  ;;  %v7893_v24 = vld [vmem:[%s8186_s12 + $0x900] sm:$0xff]  }
 0x127   : > { %v7894_v25 = vld [vmem:[%s8186_s12 + $0x980] sm:$0xff]  }
 0x128   : > { %7117 = vmatpush3.bf16.msra.mxu0 %v7845_v26  ;;  %v313_v26 = vld [vmem:[%s8181_s8 + $0x90] sm:$0xff] }
 0x129   : > { %7139 = vmatpush3.bf16.msra.mxu1 %v7846_v27  ;;  %7118 = vmatprep.subr.bf16.mxu0 %v7847_v28  ;;  %v314_v27 = vld [vmem:[%s8181_s8 + $0x98] sm:$0xff] }
 0x12a   : > { %7140 = vmatprep.subr.bf16.mxu1 %v7848_v29  ;;  %v6209_v29 = vcombine.low %v313_v26, %v313_v26 }
 0x12c   : > { %7119 = vmatpush3.bf16.msra.mxu0 %v7849_v30  ;;  %v6210_v30 = vcombine.high %v313_v26, %v313_v26 }
 0x12d   : > { %7141 = vmatpush3.bf16.msra.mxu1 %v7850_v31  ;;  %7120 = vmatprep.subr.bf16.mxu0 %v7851_v32  ;;  %v6211_v31 = vcombine.low %v314_v27, %v314_v27 }
 0x12e   : > { %7142 = vmatprep.subr.bf16.mxu1 %v7852_v33  ;;  %v7899_v33 = vld [vmem:[%s8186_s12 + $0xa78] sm:$0xff]  }
 0x130   : > { %7121 = vmatpush3.bf16.msra.mxu0 %v7853_v34  ;;  %v6212_v34 = vcombine.high %v314_v27, %v314_v27  ;;  %v7938_v27 = vld [vmem:[%s8186_s12 + $0xbb8] sm:$0xff]  }
 0x131   : > { %7143 = vmatpush3.bf16.msra.mxu1 %v7854_v35  ;;  %7122 = vmatprep.subr.bf16.mxu0 %v7855_v36  ;;  %v7900_v35 = vld [vmem:[%s8186_s12 + $0xaf8] sm:$0xff]  }
 0x132   : > { %7144 = vmatprep.subr.bf16.mxu1 %v7856_v37  ;;  %v7901_v37 = vld [vmem:[%s8186_s12 + $0xa38] sm:$0xff]  }
 0x134   : > { %7123 = vmatpush3.bf16.msra.mxu0 %v7857_v38 }
 0x135   : > { %7145 = vmatpush3.bf16.msra.mxu1 %v7858_v39  ;;  %7152 = vmatprep.subr.bf16.mxu0 %v7863_v48 }
 0x136   : > { %7174 = vmatprep.subr.bf16.mxu1 %v7864_v49  ;;  %v7905_v49 = vld [vmem:[%s8186_s12 + $0xa30] sm:$0xff]  }
 0x137   : > { %v6860_v42 = vpop.f32.mrf.mxu0  ;;  %5320 = vmatmul.mubr.bf16.vlgmr.msra.gmra.mxu0 %v6205_v43 }
 0x138   : > { %v6882_v47 = vpop.f32.mrf.mxu1  ;;  %5360 = vmatmul.mubr.bf16.vlgmr.msra.gmra.mxu1 %v6207_v45  ;;  %7153 = vmatpush3.bf16.msra.mxu0 %v7865_v51  ;;  %v7903_v45 = vld [vmem:[%s8186_s12 + $0xa70] sm:$0xff]  }
 0x139   : > { %v6861_v50 = vpop.f32.mrf.mxu0  ;;  %7175 = vmatpush3.bf16.msra.mxu1 %v7866_v54  ;;  %7154 = vmatprep.subr.bf16.mxu0 %v7867_v59  ;;  %v7906_v51 = vld [vmem:[%s8186_s12 + $0xab0] sm:$0xff]   ;;  %v7909_v54 = vld [vmem:[%s8186_s12 + $0xa28] sm:$0xff]   ;;  %v7914_v59 = vld [vmem:[%s8186_s12 + $0xaa0] sm:$0xff]  }
 0x13a   : > { %v6862_v52 = vadd.f32 %v6861_v50, %v6860_v42  ;;  %v6883_v53 = vpop.f32.mrf.mxu1  ;;  %7176 = vmatprep.subr.bf16.mxu1 %v7868_v60  ;;  %5399 = vmatprep.mubr.bf16.mxu0 %v6210_v30  ;;  %v7915_v60 = vld [vmem:[%s8186_s12 + $0xa58] sm:$0xff]  }
 0x13b   : > { %v6884_v55 = vadd.f32 %v6883_v53, %v6882_v47  ;;  %v6863_v56 = vpop.f32.mrf.mxu0  ;;  %5439 = vmatprep.mubr.bf16.mxu1 %v6212_v34  ;;  %v7908_v53 = vld [vmem:[%s8186_s12 + $0xae8] sm:$0xff]  }
 0x13c   : > { %v4842_v57 = vadd.f32 %v6862_v52, %v8470_v13  ;;  %v6885_v58 = vpop.f32.mrf.mxu1  ;;  %7155 = vmatpush3.bf16.msra.mxu0 %v7869_v63  ;;  %v7882_v13 = vld [vmem:[%s8186_s12 + $0x998] sm:$0xff]   ;;  %v7907_v52 = vld [vmem:[%s8186_s12 + $0xa68] sm:$0xff]   ;;  %v7911_v56 = vld [vmem:[%s8186_s12 + $0xa60] sm:$0xff]  }
 0x13d   : > { %v6864_v61 = vpop.f32.mrf.mxu0  ;;  %7177 = vmatpush3.bf16.msra.mxu1 %v7870_v1  ;;  %7156 = vmatprep.subr.bf16.mxu0 %v7871_v2  ;;  %v7913_v58 = vld [vmem:[%s8186_s12 + $0xa20] sm:$0xff]   ;;  %v7918_v63 = vld [vmem:[%s8186_s12 + $0xa98] sm:$0xff]   ;;  %v7920_v1 = vld [vmem:[%s8186_s12 + $0xad0] sm:$0xff]  }
 0x13e   : > { %v8507_v62 = vadd.f32 %v6884_v55, %v4842_v57  ;;  %v6886_v0 = vpop.f32.mrf.mxu1  ;;  %7178 = vmatprep.subr.bf16.mxu1 %v7872_v3  ;;  %v7910_v55 = vld [vmem:[%s8186_s12 + $0xaa8] sm:$0xff]   ;;  %v7912_v57 = vld [vmem:[%s8186_s12 + $0xae0] sm:$0xff]   ;;  %v7916_v61 = vld [vmem:[%s8186_s12 + $0xad8] sm:$0xff]  }
 0x13f   : > { %v7919_v0 = vld [vmem:[%s8186_s12 + $0xa50] sm:$0xff]  }
 0x140   : > { %7157 = vmatpush3.bf16.msra.mxu0 %v7873_v4  ;;  %v7921_v2 = vld [vmem:[%s8186_s12 + $0xa10] sm:$0xff]   ;;  %v7923_v4 = vld [vmem:[%s8186_s12 + $0xa48] sm:$0xff]  }
 0x141   : > { %7179 = vmatpush3.bf16.msra.mxu1 %v7874_v5  ;;  %7158 = vmatprep.subr.bf16.mxu0 %v7875_v6  ;;  %v7922_v3 = vld [vmem:[%s8186_s12 + $0xa90] sm:$0xff]   ;;  %v7924_v5 = vld [vmem:[%s8186_s12 + $0xac8] sm:$0xff]  }
 0x142   : > { %7180 = vmatprep.subr.bf16.mxu1 %v7876_v7  ;;  %v7925_v6 = vld [vmem:[%s8186_s12 + $0xa08] sm:$0xff]  }
 0x143   : > { %v7926_v7 = vld [vmem:[%s8186_s12 + $0xa88] sm:$0xff]  }
 0x144   : > { %7159 = vmatpush3.bf16.msra.mxu0 %v7877_v8  ;;  %v7927_v8 = vld [vmem:[%s8186_s12 + $0xa40] sm:$0xff]  }
 0x145   : > { %7181 = vmatpush3.bf16.msra.mxu1 %v7878_v9  ;;  %7160 = vmatprep.subr.bf16.mxu0 %v7879_v10  ;;  %v7928_v9 = vld [vmem:[%s8186_s12 + $0xac0] sm:$0xff]  }
 0x146   : > { %7182 = vmatprep.subr.bf16.mxu1 %v7880_v11  ;;  %v7929_v10 = vld [vmem:[%s8186_s12 + $0xa00] sm:$0xff]  }
 0x147   : > { %v7930_v11 = vld [vmem:[%s8186_s12 + $0xa80] sm:$0xff]  }
 0x148   : > { %7161 = vmatpush3.bf16.msra.mxu0 %v7881_v12  ;;  %v315_v12 = vld [vmem:[%s8181_s8 + $0xa0] sm:$0xff] }
 0x149   : > { %7183 = vmatpush3.bf16.msra.mxu1 %v7882_v13  ;;  %7162 = vmatprep.subr.bf16.mxu0 %v7883_v14  ;;  %v6213_v13 = vcombine.low %v315_v12, %v315_v12  ;;  %v6214_v14 = vcombine.high %v315_v12, %v315_v12  ;;  %v7974_v12 = vld [vmem:[%s8186_s12 + $0xcb8] sm:$0xff]  }
 0x14a   : > { %7184 = vmatprep.subr.bf16.mxu1 %v7884_v15  ;;  %v316_v15 = vld [vmem:[%s8181_s8 + $0xa8] sm:$0xff] }
 0x14c   : > { %7163 = vmatpush3.bf16.msra.mxu0 %v7885_v16 }
 0x14d   : > { %7185 = vmatpush3.bf16.msra.mxu1 %v7886_v17  ;;  %7164 = vmatprep.subr.bf16.mxu0 %v7887_v18  ;;  %v6215_v18 = vcombine.low %v316_v15, %v316_v15 }
 0x14e   : > { %7186 = vmatprep.subr.bf16.mxu1 %v7888_v19  ;;  %v6216_v19 = vcombine.high %v316_v15, %v316_v15 }
 0x150   : > { %7165 = vmatpush3.bf16.msra.mxu0 %v7889_v20  ;;  %v7935_v20 = vld [vmem:[%s8186_s12 + $0xb78] sm:$0xff]  }
 0x151   : > { %7187 = vmatpush3.bf16.msra.mxu1 %v7890_v21  ;;  %7166 = vmatprep.subr.bf16.mxu0 %v7891_v22  ;;  %v7936_v21 = vld [vmem:[%s8186_s12 + $0xbf8] sm:$0xff]  }
 0x152   : > { %7188 = vmatprep.subr.bf16.mxu1 %v7892_v23 }
 0x154   : > { %7167 = vmatpush3.bf16.msra.mxu0 %v7893_v24  ;;  %v7937_v24 = vld [vmem:[%s8186_s12 + $0xb38] sm:$0xff]  }
 0x155   : > { %7189 = vmatpush3.bf16.msra.mxu1 %v7894_v25  ;;  %7196 = vmatprep.subr.bf16.mxu0 %v7899_v33 }
 0x156   : > { %7218 = vmatprep.subr.bf16.mxu1 %v7900_v35 }
 0x157   : > { %v6904_v28 = vpop.f32.mrf.mxu0  ;;  %5400 = vmatmul.mubr.bf16.vlgmr.msra.gmra.mxu0 %v6209_v29 }
 0x158   : > { %v6926_v32 = vpop.f32.mrf.mxu1  ;;  %5440 = vmatmul.mubr.bf16.vlgmr.msra.gmra.mxu1 %v6211_v31  ;;  %7197 = vmatpush3.bf16.msra.mxu0 %v7901_v37  ;;  %v7939_v31 = vld [vmem:[%s8186_s12 + $0xb70] sm:$0xff]  }
 0x159   : > { %v6905_v36 = vpop.f32.mrf.mxu0  ;;  %7219 = vmatpush3.bf16.msra.mxu1 %v7902_v40  ;;  %7198 = vmatprep.subr.bf16.mxu0 %v7903_v45  ;;  %v7942_v37 = vld [vmem:[%s8186_s12 + $0xbb0] sm:$0xff]   ;;  %v7945_v40 = vld [vmem:[%s8186_s12 + $0xb28] sm:$0xff]   ;;  %v7950_v45 = vld [vmem:[%s8186_s12 + $0xba0] sm:$0xff]  }
 0x15a   : > { %v6906_v38 = vadd.f32 %v6905_v36, %v6904_v28  ;;  %v6927_v39 = vpop.f32.mrf.mxu1  ;;  %7220 = vmatprep.subr.bf16.mxu1 %v7904_v46  ;;  %5479 = vmatprep.mubr.bf16.mxu0 %v6214_v14  ;;  %v7941_v36 = vld [vmem:[%s8186_s12 + $0xb30] sm:$0xff]   ;;  %v7951_v46 = vld [vmem:[%s8186_s12 + $0xb58] sm:$0xff]  }
 0x15b   : > { %v6928_v41 = vadd.f32 %v6927_v39, %v6926_v32  ;;  %v6907_v42 = vpop.f32.mrf.mxu0  ;;  %5519 = vmatprep.mubr.bf16.mxu1 %v6216_v19  ;;  %v7940_v32 = vld [vmem:[%s8186_s12 + $0xbf0] sm:$0xff]   ;;  %v7944_v39 = vld [vmem:[%s8186_s12 + $0xbe8] sm:$0xff]  }
 0x15c   : > { %v4922_v43 = vadd.f32 %v6906_v38, %v8507_v62  ;;  %v6929_v44 = vpop.f32.mrf.mxu1  ;;  %7199 = vmatpush3.bf16.msra.mxu0 %v7905_v49  ;;  %v7917_v62 = vld [vmem:[%s8186_s12 + $0xa18] sm:$0xff]   ;;  %v7943_v38 = vld [vmem:[%s8186_s12 + $0xb68] sm:$0xff]   ;;  %v7947_v42 = vld [vmem:[%s8186_s12 + $0xb60] sm:$0xff]  }
 0x15d   : > { %v6908_v47 = vpop.f32.mrf.mxu0  ;;  %7221 = vmatpush3.bf16.msra.mxu1 %v7906_v51  ;;  %7200 = vmatprep.subr.bf16.mxu0 %v7907_v52  ;;  %v7949_v44 = vld [vmem:[%s8186_s12 + $0xb20] sm:$0xff]   ;;  %v7954_v49 = vld [vmem:[%s8186_s12 + $0xb98] sm:$0xff]   ;;  %v7956_v51 = vld [vmem:[%s8186_s12 + $0xbd0] sm:$0xff]  }
 0x15e   : > { %v8544_v48 = vadd.f32 %v6928_v41, %v4922_v43  ;;  %v6930_v50 = vpop.f32.mrf.mxu1  ;;  %7222 = vmatprep.subr.bf16.mxu1 %v7908_v53  ;;  %v7946_v41 = vld [vmem:[%s8186_s12 + $0xba8] sm:$0xff]   ;;  %v7948_v43 = vld [vmem:[%s8186_s12 + $0xbe0] sm:$0xff]   ;;  %v7952_v47 = vld [vmem:[%s8186_s12 + $0xbd8] sm:$0xff]  }
 0x15f   : > { %v7955_v50 = vld [vmem:[%s8186_s12 + $0xb50] sm:$0xff]  }
 0x160   : > { %7201 = vmatpush3.bf16.msra.mxu0 %v7909_v54  ;;  %v7957_v52 = vld [vmem:[%s8186_s12 + $0xb10] sm:$0xff]   ;;  %v7959_v54 = vld [vmem:[%s8186_s12 + $0xb48] sm:$0xff]  }
 0x161   : > { %7223 = vmatpush3.bf16.msra.mxu1 %v7910_v55  ;;  %7202 = vmatprep.subr.bf16.mxu0 %v7911_v56  ;;  %v7958_v53 = vld [vmem:[%s8186_s12 + $0xb90] sm:$0xff]   ;;  %v7960_v55 = vld [vmem:[%s8186_s12 + $0xbc8] sm:$0xff]  }
 0x162   : > { %7224 = vmatprep.subr.bf16.mxu1 %v7912_v57  ;;  %v7961_v56 = vld [vmem:[%s8186_s12 + $0xb08] sm:$0xff]  }
 0x163   : > { %v7962_v57 = vld [vmem:[%s8186_s12 + $0xb88] sm:$0xff]  }
 0x164   : > { %7203 = vmatpush3.bf16.msra.mxu0 %v7913_v58  ;;  %v7963_v58 = vld [vmem:[%s8186_s12 + $0xb40] sm:$0xff]  }
 0x165   : > { %7225 = vmatpush3.bf16.msra.mxu1 %v7914_v59  ;;  %7204 = vmatprep.subr.bf16.mxu0 %v7915_v60  ;;  %v7964_v59 = vld [vmem:[%s8186_s12 + $0xbc0] sm:$0xff]  }
 0x166   : > { %7226 = vmatprep.subr.bf16.mxu1 %v7916_v61  ;;  %v7965_v60 = vld [vmem:[%s8186_s12 + $0xb00] sm:$0xff]  }
 0x167   : > { %v7966_v61 = vld [vmem:[%s8186_s12 + $0xb80] sm:$0xff]  }
 0x168   : > { %7205 = vmatpush3.bf16.msra.mxu0 %v7917_v62  ;;  %v317_v62 = vld [vmem:[%s8181_s8 + $0xb0] sm:$0xff] }
 0x169   : > { %7227 = vmatpush3.bf16.msra.mxu1 %v7918_v63  ;;  %7206 = vmatprep.subr.bf16.mxu0 %v7919_v0  ;;  %v318_v63 = vld [vmem:[%s8181_s8 + $0xb8] sm:$0xff] }
 0x16a   : > { %7228 = vmatprep.subr.bf16.mxu1 %v7920_v1  ;;  %v6217_v1 = vcombine.low %v317_v62, %v317_v62 }
 0x16c   : > { %7207 = vmatpush3.bf16.msra.mxu0 %v7921_v2  ;;  %v6218_v2 = vcombine.high %v317_v62, %v317_v62  ;;  %v8010_v62 = vld [vmem:[%s8186_s12 + $0xdb8] sm:$0xff]  }
 0x16d   : > { %7229 = vmatpush3.bf16.msra.mxu1 %v7922_v3  ;;  %7208 = vmatprep.subr.bf16.mxu0 %v7923_v4  ;;  %v6219_v3 = vcombine.low %v318_v63, %v318_v63  ;;  %v6220_v4 = vcombine.high %v318_v63, %v318_v63 }
 0x16e   : > { %7230 = vmatprep.subr.bf16.mxu1 %v7924_v5 }
 0x170   : > { %7209 = vmatpush3.bf16.msra.mxu0 %v7925_v6  ;;  %v7971_v6 = vld [vmem:[%s8186_s12 + $0xc78] sm:$0xff]  }
 0x171   : > { %7231 = vmatpush3.bf16.msra.mxu1 %v7926_v7  ;;  %7210 = vmatprep.subr.bf16.mxu0 %v7927_v8  ;;  %v7972_v7 = vld [vmem:[%s8186_s12 + $0xcf8] sm:$0xff]  }
 0x172   : > { %7232 = vmatprep.subr.bf16.mxu1 %v7928_v9  ;;  %v7973_v9 = vld [vmem:[%s8186_s12 + $0xc38] sm:$0xff]  }
 0x174   : > { %7211 = vmatpush3.bf16.msra.mxu0 %v7929_v10 }
 0x175   : > { %7233 = vmatpush3.bf16.msra.mxu1 %v7930_v11  ;;  %7240 = vmatprep.subr.bf16.mxu0 %v7935_v20 }
 0x176   : > { %7262 = vmatprep.subr.bf16.mxu1 %v7936_v21  ;;  %v7977_v21 = vld [vmem:[%s8186_s12 + $0xc30] sm:$0xff]  }
 0x177   : > { %v6948_v16 = vpop.f32.mrf.mxu0  ;;  %5480 = vmatmul.mubr.bf16.vlgmr.msra.gmra.mxu0 %v6213_v13 }
 0x178   : > { %v6970_v17 = vpop.f32.mrf.mxu1  ;;  %5520 = vmatmul.mubr.bf16.vlgmr.msra.gmra.mxu1 %v6215_v18  ;;  %7241 = vmatpush3.bf16.msra.mxu0 %v7937_v24  ;;  %v7976_v18 = vld [vmem:[%s8186_s12 + $0xcf0] sm:$0xff]   ;;  %v7979_v24 = vld [vmem:[%s8186_s12 + $0xc68] sm:$0xff]  }
 0x179   : > { %v6949_v22 = vpop.f32.mrf.mxu0  ;;  %7263 = vmatpush3.bf16.msra.mxu1 %v7938_v27  ;;  %7242 = vmatprep.subr.bf16.mxu0 %v7939_v31  ;;  %v7982_v27 = vld [vmem:[%s8186_s12 + $0xca8] sm:$0xff]   ;;  %v7986_v31 = vld [vmem:[%s8186_s12 + $0xca0] sm:$0xff]  }
 0x17a   : > { %v6971_v23 = vpop.f32.mrf.mxu1  ;;  %v6950_v25 = vadd.f32 %v6949_v22, %v6948_v16  ;;  %7264 = vmatprep.subr.bf16.mxu1 %v7940_v32  ;;  %5559 = vmatprep.mubr.bf16.mxu0 %v6218_v2  ;;  %v7987_v32 = vld [vmem:[%s8186_s12 + $0xc58] sm:$0xff]  }
 0x17b   : > { %v6972_v26 = vadd.f32 %v6971_v23, %v6970_v17  ;;  %v6951_v28 = vpop.f32.mrf.mxu0  ;;  %5599 = vmatprep.mubr.bf16.mxu1 %v6220_v4  ;;  %v7975_v17 = vld [vmem:[%s8186_s12 + $0xc70] sm:$0xff]  }
 0x17c   : > { %v6973_v29 = vpop.f32.mrf.mxu1  ;;  %v5002_v30 = vadd.f32 %v6950_v25, %v8544_v48  ;;  %7243 = vmatpush3.bf16.msra.mxu0 %v7941_v36  ;;  %v7953_v48 = vld [vmem:[%s8186_s12 + $0xb18] sm:$0xff]   ;;  %v7978_v23 = vld [vmem:[%s8186_s12 + $0xcb0] sm:$0xff]   ;;  %v7980_v25 = vld [vmem:[%s8186_s12 + $0xce8] sm:$0xff]  }
 0x17d   : > { %v6952_v33 = vpop.f32.mrf.mxu0  ;;  %7265 = vmatpush3.bf16.msra.mxu1 %v7942_v37  ;;  %7244 = vmatprep.subr.bf16.mxu0 %v7943_v38  ;;  %v7983_v28 = vld [vmem:[%s8186_s12 + $0xc60] sm:$0xff]   ;;  %v7991_v36 = vld [vmem:[%s8186_s12 + $0xc50] sm:$0xff]  }
 0x17e   : > { %v6974_v34 = vpop.f32.mrf.mxu1  ;;  %v8581_v35 = vadd.f32 %v6972_v26, %v5002_v30  ;;  %7266 = vmatprep.subr.bf16.mxu1 %v7944_v39  ;;  %v7981_v26 = vld [vmem:[%s8186_s12 + $0xc28] sm:$0xff]   ;;  %v7984_v29 = vld [vmem:[%s8186_s12 + $0xce0] sm:$0xff]   ;;  %v7988_v33 = vld [vmem:[%s8186_s12 + $0xcd8] sm:$0xff]  }
 0x17f   : > { %v7985_v30 = vld [vmem:[%s8186_s12 + $0xc20] sm:$0xff]   ;;  %v7989_v34 = vld [vmem:[%s8186_s12 + $0xc18] sm:$0xff]   ;;  %v7992_v37 = vld [vmem:[%s8186_s12 + $0xcd0] sm:$0xff]  }
 0x180   : > { %7245 = vmatpush3.bf16.msra.mxu0 %v7945_v40  ;;  %v7993_v38 = vld [vmem:[%s8186_s12 + $0xc10] sm:$0xff]   ;;  %v7995_v40 = vld [vmem:[%s8186_s12 + $0xc48] sm:$0xff]  }
 0x181   : > { %7267 = vmatpush3.bf16.msra.mxu1 %v7946_v41  ;;  %7246 = vmatprep.subr.bf16.mxu0 %v7947_v42  ;;  %v7994_v39 = vld [vmem:[%s8186_s12 + $0xc90] sm:$0xff]   ;;  %v7996_v41 = vld [vmem:[%s8186_s12 + $0xcc8] sm:$0xff]  }
 0x182   : > { %7268 = vmatprep.subr.bf16.mxu1 %v7948_v43  ;;  %v7997_v42 = vld [vmem:[%s8186_s12 + $0xc08] sm:$0xff]   ;;  %v8012_v4 = vld [vmem:[%s8186_s12 + $0xdf0] sm:$0xff]  }
 0x183   : > { %v7998_v43 = vld [vmem:[%s8186_s12 + $0xc88] sm:$0xff]  }
 0x184   : > { %7247 = vmatpush3.bf16.msra.mxu0 %v7949_v44  ;;  %v7999_v44 = vld [vmem:[%s8186_s12 + $0xc40] sm:$0xff]  }
 0x185   : > { %7269 = vmatpush3.bf16.msra.mxu1 %v7950_v45  ;;  %7248 = vmatprep.subr.bf16.mxu0 %v7951_v46  ;;  %v8000_v45 = vld [vmem:[%s8186_s12 + $0xcc0] sm:$0xff]  }
 0x186   : > { %7270 = vmatprep.subr.bf16.mxu1 %v7952_v47  ;;  %v8001_v46 = vld [vmem:[%s8186_s12 + $0xc00] sm:$0xff]  }
 0x187   : > { %v8002_v47 = vld [vmem:[%s8186_s12 + $0xc80] sm:$0xff]  }
 0x188   : > { %7249 = vmatpush3.bf16.msra.mxu0 %v7953_v48  ;;  %v319_v48 = vld [vmem:[%s8181_s8 + $0xc0] sm:$0xff] }
 0x189   : > { %7271 = vmatpush3.bf16.msra.mxu1 %v7954_v49  ;;  %7250 = vmatprep.subr.bf16.mxu0 %v7955_v50  ;;  %v320_v49 = vld [vmem:[%s8181_s8 + $0xc8] sm:$0xff] }
 0x18a   : > { %7272 = vmatprep.subr.bf16.mxu1 %v7956_v51  ;;  %v6221_v51 = vcombine.low %v319_v48, %v319_v48 }
 0x18c   : > { %7251 = vmatpush3.bf16.msra.mxu0 %v7957_v52  ;;  %v6222_v52 = vcombine.high %v319_v48, %v319_v48 }
 0x18d   : > { %7273 = vmatpush3.bf16.msra.mxu1 %v7958_v53  ;;  %7252 = vmatprep.subr.bf16.mxu0 %v7959_v54  ;;  %v6223_v53 = vcombine.low %v320_v49, %v320_v49 }
 0x18e   : > { %7274 = vmatprep.subr.bf16.mxu1 %v7960_v55  ;;  %v8007_v55 = vld [vmem:[%s8186_s12 + $0xd78] sm:$0xff]  }
 0x190   : > { %7253 = vmatpush3.bf16.msra.mxu0 %v7961_v56  ;;  %v6224_v56 = vcombine.high %v320_v49, %v320_v49  ;;  %v8046_v49 = vld [vmem:[%s8186_s12 + $0xeb8] sm:$0xff]  }
 0x191   : > { %7275 = vmatpush3.bf16.msra.mxu1 %v7962_v57  ;;  %7254 = vmatprep.subr.bf16.mxu0 %v7963_v58  ;;  %v8008_v57 = vld [vmem:[%s8186_s12 + $0xdf8] sm:$0xff]  }
 0x192   : > { %7276 = vmatprep.subr.bf16.mxu1 %v7964_v59  ;;  %v8009_v59 = vld [vmem:[%s8186_s12 + $0xd38] sm:$0xff]  }
 0x194   : > { %7255 = vmatpush3.bf16.msra.mxu0 %v7965_v60 }
 0x195   : > { %7277 = vmatpush3.bf16.msra.mxu1 %v7966_v61  ;;  %7284 = vmatprep.subr.bf16.mxu0 %v7971_v6 }
 0x196   : > { %7306 = vmatprep.subr.bf16.mxu1 %v7972_v7  ;;  %v8013_v7 = vld [vmem:[%s8186_s12 + $0xd30] sm:$0xff]  }
 0x197   : > { %v6992_v0 = vpop.f32.mrf.mxu0  ;;  %5560 = vmatmul.mubr.bf16.vlgmr.msra.gmra.mxu0 %v6217_v1 }
 0x198   : > { %v7014_v5 = vpop.f32.mrf.mxu1  ;;  %5600 = vmatmul.mubr.bf16.vlgmr.msra.gmra.mxu1 %v6219_v3  ;;  %7285 = vmatpush3.bf16.msra.mxu0 %v7973_v9  ;;  %v8011_v3 = vld [vmem:[%s8186_s12 + $0xd70] sm:$0xff]  }
 0x199   : > { %v6993_v8 = vpop.f32.mrf.mxu0  ;;  %7307 = vmatpush3.bf16.msra.mxu1 %v7974_v12  ;;  %7286 = vmatprep.subr.bf16.mxu0 %v7975_v17  ;;  %v8014_v9 = vld [vmem:[%s8186_s12 + $0xdb0] sm:$0xff]   ;;  %v8017_v12 = vld [vmem:[%s8186_s12 + $0xd28] sm:$0xff]   ;;  %v8022_v17 = vld [vmem:[%s8186_s12 + $0xda0] sm:$0xff]  }
 0x19a   : > { %v6994_v10 = vadd.f32 %v6993_v8, %v6992_v0  ;;  %v7015_v11 = vpop.f32.mrf.mxu1  ;;  %7308 = vmatprep.subr.bf16.mxu1 %v7976_v18  ;;  %5639 = vmatprep.mubr.bf16.mxu0 %v6222_v52  ;;  %v8023_v18 = vld [vmem:[%s8186_s12 + $0xd58] sm:$0xff]  }
 0x19b   : > { %v7016_v13 = vadd.f32 %v7015_v11, %v7014_v5  ;;  %v6995_v14 = vpop.f32.mrf.mxu0  ;;  %5679 = vmatprep.mubr.bf16.mxu1 %v6224_v56  ;;  %v8016_v11 = vld [vmem:[%s8186_s12 + $0xde8] sm:$0xff]  }
 0x19c   : > { %v5082_v15 = vadd.f32 %v6994_v10, %v8581_v35  ;;  %v7017_v16 = vpop.f32.mrf.mxu1  ;;  %7287 = vmatpush3.bf16.msra.mxu0 %v7977_v21  ;;  %v7990_v35 = vld [vmem:[%s8186_s12 + $0xc98] sm:$0xff]   ;;  %v8015_v10 = vld [vmem:[%s8186_s12 + $0xd68] sm:$0xff]   ;;  %v8019_v14 = vld [vmem:[%s8186_s12 + $0xd60] sm:$0xff]  }
 0x19d   : > { %v6996_v19 = vpop.f32.mrf.mxu0  ;;  %7309 = vmatpush3.bf16.msra.mxu1 %v7978_v23  ;;  %7288 = vmatprep.subr.bf16.mxu0 %v7979_v24  ;;  %v8021_v16 = vld [vmem:[%s8186_s12 + $0xd20] sm:$0xff]   ;;  %v8026_v21 = vld [vmem:[%s8186_s12 + $0xd98] sm:$0xff]   ;;  %v8028_v23 = vld [vmem:[%s8186_s12 + $0xdd0] sm:$0xff]  }
 0x19e   : > { %v8618_v20 = vadd.f32 %v7016_v13, %v5082_v15  ;;  %v7018_v22 = vpop.f32.mrf.mxu1  ;;  %7310 = vmatprep.subr.bf16.mxu1 %v7980_v25  ;;  %v8018_v13 = vld [vmem:[%s8186_s12 + $0xda8] sm:$0xff]   ;;  %v8020_v15 = vld [vmem:[%s8186_s12 + $0xde0] sm:$0xff]   ;;  %v8024_v19 = vld [vmem:[%s8186_s12 + $0xdd8] sm:$0xff]  }
 0x19f   : > { %v8027_v22 = vld [vmem:[%s8186_s12 + $0xd50] sm:$0xff]  }
 0x1a0   : > { %7289 = vmatpush3.bf16.msra.mxu0 %v7981_v26  ;;  %v8029_v24 = vld [vmem:[%s8186_s12 + $0xd10] sm:$0xff]   ;;  %v8031_v26 = vld [vmem:[%s8186_s12 + $0xd48] sm:$0xff]  }
 0x1a1   : > { %7311 = vmatpush3.bf16.msra.mxu1 %v7982_v27  ;;  %7290 = vmatprep.subr.bf16.mxu0 %v7983_v28  ;;  %v8030_v25 = vld [vmem:[%s8186_s12 + $0xd90] sm:$0xff]   ;;  %v8032_v27 = vld [vmem:[%s8186_s12 + $0xdc8] sm:$0xff]  }
 0x1a2   : > { %7312 = vmatprep.subr.bf16.mxu1 %v7984_v29  ;;  %v8033_v28 = vld [vmem:[%s8186_s12 + $0xd08] sm:$0xff]  }
 0x1a3   : > { %v8034_v29 = vld [vmem:[%s8186_s12 + $0xd88] sm:$0xff]  }
 0x1a4   : > { %7291 = vmatpush3.bf16.msra.mxu0 %v7985_v30  ;;  %v8035_v30 = vld [vmem:[%s8186_s12 + $0xd40] sm:$0xff]  }
 0x1a5   : > { %7313 = vmatpush3.bf16.msra.mxu1 %v7986_v31  ;;  %7292 = vmatprep.subr.bf16.mxu0 %v7987_v32  ;;  %v8036_v31 = vld [vmem:[%s8186_s12 + $0xdc0] sm:$0xff]  }
 0x1a6   : > { %7314 = vmatprep.subr.bf16.mxu1 %v7988_v33  ;;  %v8037_v32 = vld [vmem:[%s8186_s12 + $0xd00] sm:$0xff]  }
 0x1a7   : > { %v8038_v33 = vld [vmem:[%s8186_s12 + $0xd80] sm:$0xff]  }
 0x1a8   : > { %7293 = vmatpush3.bf16.msra.mxu0 %v7989_v34  ;;  %v321_v34 = vld [vmem:[%s8181_s8 + $0xd0] sm:$0xff] }
 0x1a9   : > { %7315 = vmatpush3.bf16.msra.mxu1 %v7990_v35  ;;  %7294 = vmatprep.subr.bf16.mxu0 %v7991_v36  ;;  %v6225_v35 = vcombine.low %v321_v34, %v321_v34  ;;  %v6226_v36 = vcombine.high %v321_v34, %v321_v34  ;;  %v8082_v34 = vld [vmem:[%s8186_s12 + $0xfb8] sm:$0xff]  }
 0x1aa   : > { %7316 = vmatprep.subr.bf16.mxu1 %v7992_v37  ;;  %v322_v37 = vld [vmem:[%s8181_s8 + $0xd8] sm:$0xff] }
 0x1ac   : > { %7295 = vmatpush3.bf16.msra.mxu0 %v7993_v38 }
 0x1ad   : > { %7317 = vmatpush3.bf16.msra.mxu1 %v7994_v39  ;;  %7296 = vmatprep.subr.bf16.mxu0 %v7995_v40  ;;  %v6227_v40 = vcombine.low %v322_v37, %v322_v37 }
 0x1ae   : > { %7318 = vmatprep.subr.bf16.mxu1 %v7996_v41  ;;  %v6228_v41 = vcombine.high %v322_v37, %v322_v37 }
 0x1b0   : > { %7297 = vmatpush3.bf16.msra.mxu0 %v7997_v42  ;;  %v8043_v42 = vld [vmem:[%s8186_s12 + $0xe78] sm:$0xff]  }
 0x1b1   : > { %7319 = vmatpush3.bf16.msra.mxu1 %v7998_v43  ;;  %7298 = vmatprep.subr.bf16.mxu0 %v7999_v44  ;;  %v8044_v43 = vld [vmem:[%s8186_s12 + $0xef8] sm:$0xff]  }
 0x1b2   : > { %7320 = vmatprep.subr.bf16.mxu1 %v8000_v45 }
 0x1b4   : > { %7299 = vmatpush3.bf16.msra.mxu0 %v8001_v46  ;;  %v8045_v46 = vld [vmem:[%s8186_s12 + $0xe38] sm:$0xff]  }
 0x1b5   : > { %7321 = vmatpush3.bf16.msra.mxu1 %v8002_v47  ;;  %7328 = vmatprep.subr.bf16.mxu0 %v8007_v55 }
 0x1b6   : > { %7350 = vmatprep.subr.bf16.mxu1 %v8008_v57 }
 0x1b7   : > { %v7036_v50 = vpop.f32.mrf.mxu0  ;;  %5640 = vmatmul.mubr.bf16.vlgmr.msra.gmra.mxu0 %v6221_v51 }
 0x1b8   : > { %v7058_v54 = vpop.f32.mrf.mxu1  ;;  %5680 = vmatmul.mubr.bf16.vlgmr.msra.gmra.mxu1 %v6223_v53  ;;  %7329 = vmatpush3.bf16.msra.mxu0 %v8009_v59  ;;  %v8047_v53 = vld [vmem:[%s8186_s12 + $0xe70] sm:$0xff]  }
 0x1b9   : > { %v7037_v58 = vpop.f32.mrf.mxu0  ;;  %7351 = vmatpush3.bf16.msra.mxu1 %v8010_v62  ;;  %7330 = vmatprep.subr.bf16.mxu0 %v8011_v3  ;;  %v8050_v59 = vld [vmem:[%s8186_s12 + $0xeb0] sm:$0xff]   ;;  %v8053_v62 = vld [vmem:[%s8186_s12 + $0xe28] sm:$0xff]   ;;  %v8058_v3 = vld [vmem:[%s8186_s12 + $0xea0] sm:$0xff]  }
 0x1ba   : > { %v7038_v60 = vadd.f32 %v7037_v58, %v7036_v50  ;;  %v7059_v61 = vpop.f32.mrf.mxu1  ;;  %7352 = vmatprep.subr.bf16.mxu1 %v8012_v4  ;;  %5719 = vmatprep.mubr.bf16.mxu0 %v6226_v36  ;;  %v8049_v58 = vld [vmem:[%s8186_s12 + $0xe30] sm:$0xff]   ;;  %v8059_v4 = vld [vmem:[%s8186_s12 + $0xe58] sm:$0xff]  }
 0x1bb   : > { %v7060_v63 = vadd.f32 %v7059_v61, %v7058_v54  ;;  %v7039_v0 = vpop.f32.mrf.mxu0  ;;  %5759 = vmatprep.mubr.bf16.mxu1 %v6228_v41  ;;  %v8048_v54 = vld [vmem:[%s8186_s12 + $0xef0] sm:$0xff]   ;;  %v8052_v61 = vld [vmem:[%s8186_s12 + $0xee8] sm:$0xff]  }
 0x1bc   : > { %v5162_v1 = vadd.f32 %v7038_v60, %v8618_v20  ;;  %v7061_v2 = vpop.f32.mrf.mxu1  ;;  %7331 = vmatpush3.bf16.msra.mxu0 %v8013_v7  ;;  %v8025_v20 = vld [vmem:[%s8186_s12 + $0xd18] sm:$0xff]   ;;  %v8051_v60 = vld [vmem:[%s8186_s12 + $0xe68] sm:$0xff]   ;;  %v8055_v0 = vld [vmem:[%s8186_s12 + $0xe60] sm:$0xff]  }
 0x1bd   : > { %v7040_v5 = vpop.f32.mrf.mxu0  ;;  %7353 = vmatpush3.bf16.msra.mxu1 %v8014_v9  ;;  %7332 = vmatprep.subr.bf16.mxu0 %v8015_v10  ;;  %v8057_v2 = vld [vmem:[%s8186_s12 + $0xe20] sm:$0xff]   ;;  %v8062_v7 = vld [vmem:[%s8186_s12 + $0xe98] sm:$0xff]   ;;  %v8064_v9 = vld [vmem:[%s8186_s12 + $0xed0] sm:$0xff]  }
 0x1be   : > { %v8655_v6 = vadd.f32 %v7060_v63, %v5162_v1  ;;  %v7062_v8 = vpop.f32.mrf.mxu1  ;;  %7354 = vmatprep.subr.bf16.mxu1 %v8016_v11  ;;  %v8054_v63 = vld [vmem:[%s8186_s12 + $0xea8] sm:$0xff]   ;;  %v8056_v1 = vld [vmem:[%s8186_s12 + $0xee0] sm:$0xff]   ;;  %v8060_v5 = vld [vmem:[%s8186_s12 + $0xed8] sm:$0xff]  }
 0x1bf   : > { %v8063_v8 = vld [vmem:[%s8186_s12 + $0xe50] sm:$0xff]  }
 0x1c0   : > { %7333 = vmatpush3.bf16.msra.mxu0 %v8017_v12  ;;  %v8065_v10 = vld [vmem:[%s8186_s12 + $0xe10] sm:$0xff]   ;;  %v8067_v12 = vld [vmem:[%s8186_s12 + $0xe48] sm:$0xff]  }
 0x1c1   : > { %7355 = vmatpush3.bf16.msra.mxu1 %v8018_v13  ;;  %7334 = vmatprep.subr.bf16.mxu0 %v8019_v14  ;;  %v8066_v11 = vld [vmem:[%s8186_s12 + $0xe90] sm:$0xff]   ;;  %v8068_v13 = vld [vmem:[%s8186_s12 + $0xec8] sm:$0xff]  }
 0x1c2   : > { %7356 = vmatprep.subr.bf16.mxu1 %v8020_v15  ;;  %v8069_v14 = vld [vmem:[%s8186_s12 + $0xe08] sm:$0xff]  }
 0x1c3   : > { %v8070_v15 = vld [vmem:[%s8186_s12 + $0xe88] sm:$0xff]  }
 0x1c4   : > { %7335 = vmatpush3.bf16.msra.mxu0 %v8021_v16  ;;  %v8071_v16 = vld [vmem:[%s8186_s12 + $0xe40] sm:$0xff]  }
 0x1c5   : > { %7357 = vmatpush3.bf16.msra.mxu1 %v8022_v17  ;;  %7336 = vmatprep.subr.bf16.mxu0 %v8023_v18  ;;  %v8072_v17 = vld [vmem:[%s8186_s12 + $0xec0] sm:$0xff]  }
 0x1c6   : > { %7358 = vmatprep.subr.bf16.mxu1 %v8024_v19  ;;  %v8073_v18 = vld [vmem:[%s8186_s12 + $0xe00] sm:$0xff]  }
 0x1c7   : > { %v8074_v19 = vld [vmem:[%s8186_s12 + $0xe80] sm:$0xff]  }
 0x1c8   : > { %7337 = vmatpush3.bf16.msra.mxu0 %v8025_v20  ;;  %v323_v20 = vld [vmem:[%s8181_s8 + $0xe0] sm:$0xff] }
 0x1c9   : > { %7359 = vmatpush3.bf16.msra.mxu1 %v8026_v21  ;;  %7338 = vmatprep.subr.bf16.mxu0 %v8027_v22  ;;  %v324_v21 = vld [vmem:[%s8181_s8 + $0xe8] sm:$0xff] }
 0x1ca   : > { %7360 = vmatprep.subr.bf16.mxu1 %v8028_v23  ;;  %v6229_v23 = vcombine.low %v323_v20, %v323_v20 }
 0x1cc   : > { %7339 = vmatpush3.bf16.msra.mxu0 %v8029_v24  ;;  %v6230_v24 = vcombine.high %v323_v20, %v323_v20 }
 0x1cd   : > { %7361 = vmatpush3.bf16.msra.mxu1 %v8030_v25  ;;  %7340 = vmatprep.subr.bf16.mxu0 %v8031_v26  ;;  %v6231_v25 = vcombine.low %v324_v21, %v324_v21  ;;  %v6232_v26 = vcombine.high %v324_v21, %v324_v21 }
 0x1ce   : > { %7362 = vmatprep.subr.bf16.mxu1 %v8032_v27 }
 0x1d0   : > { %7341 = vmatpush3.bf16.msra.mxu0 %v8033_v28  ;;  %v8079_v28 = vld [vmem:[%s8186_s12 + $0xf78] sm:$0xff]  }
 0x1d1   : > { %7363 = vmatpush3.bf16.msra.mxu1 %v8034_v29  ;;  %7342 = vmatprep.subr.bf16.mxu0 %v8035_v30  ;;  %v8080_v29 = vld [vmem:[%s8186_s12 + $0xff8] sm:$0xff]  }
 0x1d2   : > { %7364 = vmatprep.subr.bf16.mxu1 %v8036_v31  ;;  %v8081_v31 = vld [vmem:[%s8186_s12 + $0xf38] sm:$0xff]  }
 0x1d4   : > { %7343 = vmatpush3.bf16.msra.mxu0 %v8037_v32 }
 0x1d5   : > { %7365 = vmatpush3.bf16.msra.mxu1 %v8038_v33  ;;  %7372 = vmatprep.subr.bf16.mxu0 %v8043_v42 }
 0x1d6   : > { %7394 = vmatprep.subr.bf16.mxu1 %v8044_v43  ;;  %v8085_v43 = vld [vmem:[%s8186_s12 + $0xf30] sm:$0xff]  }
 0x1d7   : > { %v7080_v38 = vpop.f32.mrf.mxu0  ;;  %5720 = vmatmul.mubr.bf16.vlgmr.msra.gmra.mxu0 %v6225_v35 }
 0x1d8   : > { %v7102_v39 = vpop.f32.mrf.mxu1  ;;  %5760 = vmatmul.mubr.bf16.vlgmr.msra.gmra.mxu1 %v6227_v40  ;;  %7373 = vmatpush3.bf16.msra.mxu0 %v8045_v46  ;;  %v8084_v40 = vld [vmem:[%s8186_s12 + $0xff0] sm:$0xff]   ;;  %v8087_v46 = vld [vmem:[%s8186_s12 + $0xf68] sm:$0xff]  }
 0x1d9   : > { %v7081_v44 = vpop.f32.mrf.mxu0  ;;  %7395 = vmatpush3.bf16.msra.mxu1 %v8046_v49  ;;  %7374 = vmatprep.subr.bf16.mxu0 %v8047_v53  ;;  %v8090_v49 = vld [vmem:[%s8186_s12 + $0xfa8] sm:$0xff]   ;;  %v8094_v53 = vld [vmem:[%s8186_s12 + $0xfa0] sm:$0xff]  }
 0x1da   : > { %v7103_v45 = vpop.f32.mrf.mxu1  ;;  %v7082_v47 = vadd.f32 %v7081_v44, %v7080_v38  ;;  %7396 = vmatprep.subr.bf16.mxu1 %v8048_v54  ;;  %5799 = vmatprep.mubr.bf16.mxu0 %v6230_v24  ;;  %v8095_v54 = vld [vmem:[%s8186_s12 + $0xf58] sm:$0xff]  }
 0x1db   : > { %v7104_v48 = vadd.f32 %v7103_v45, %v7102_v39  ;;  %v7083_v50 = vpop.f32.mrf.mxu0  ;;  %5839 = vmatprep.mubr.bf16.mxu1 %v6232_v26  ;;  %v8083_v39 = vld [vmem:[%s8186_s12 + $0xf70] sm:$0xff]  }
 0x1dc   : > { %v7105_v51 = vpop.f32.mrf.mxu1  ;;  %v5242_v52 = vadd.f32 %v7082_v47, %v8655_v6  ;;  %7375 = vmatpush3.bf16.msra.mxu0 %v8049_v58  ;;  %v8061_v6 = vld [vmem:[%s8186_s12 + $0xe18] sm:$0xff]   ;;  %v8086_v45 = vld [vmem:[%s8186_s12 + $0xfb0] sm:$0xff]   ;;  %v8088_v47 = vld [vmem:[%s8186_s12 + $0xfe8] sm:$0xff]  }
 0x1dd   : > { %v7084_v55 = vpop.f32.mrf.mxu0  ;;  %7397 = vmatpush3.bf16.msra.mxu1 %v8050_v59  ;;  %7376 = vmatprep.subr.bf16.mxu0 %v8051_v60  ;;  %v8091_v50 = vld [vmem:[%s8186_s12 + $0xf60] sm:$0xff]   ;;  %v8099_v58 = vld [vmem:[%s8186_s12 + $0xf50] sm:$0xff]  }
 0x1de   : > { %v7106_v56 = vpop.f32.mrf.mxu1  ;;  %v8692_v57 = vadd.f32 %v7104_v48, %v5242_v52  ;;  %7398 = vmatprep.subr.bf16.mxu1 %v8052_v61  ;;  %v8089_v48 = vld [vmem:[%s8186_s12 + $0xf28] sm:$0xff]   ;;  %v8092_v51 = vld [vmem:[%s8186_s12 + $0xfe0] sm:$0xff]   ;;  %v8096_v55 = vld [vmem:[%s8186_s12 + $0xfd8] sm:$0xff]  }
 0x1df   : > { %v8093_v52 = vld [vmem:[%s8186_s12 + $0xf20] sm:$0xff]   ;;  %v8097_v56 = vld [vmem:[%s8186_s12 + $0xf18] sm:$0xff]   ;;  %v8100_v59 = vld [vmem:[%s8186_s12 + $0xfd0] sm:$0xff]  }
 0x1e0   : > { %7377 = vmatpush3.bf16.msra.mxu0 %v8053_v62  ;;  %v8101_v60 = vld [vmem:[%s8186_s12 + $0xf10] sm:$0xff]   ;;  %v8103_v62 = vld [vmem:[%s8186_s12 + $0xf48] sm:$0xff]  }
 0x1e1   : > { %7399 = vmatpush3.bf16.msra.mxu1 %v8054_v63  ;;  %7378 = vmatprep.subr.bf16.mxu0 %v8055_v0  ;;  %v8102_v61 = vld [vmem:[%s8186_s12 + $0xf90] sm:$0xff]   ;;  %v8104_v63 = vld [vmem:[%s8186_s12 + $0xfc8] sm:$0xff]  }
 0x1e2   : > { %7400 = vmatprep.subr.bf16.mxu1 %v8056_v1  ;;  %v8105_v0 = vld [vmem:[%s8186_s12 + $0xf08] sm:$0xff]  }
 0x1e3   : > { %v8106_v1 = vld [vmem:[%s8186_s12 + $0xf88] sm:$0xff]  }
 0x1e4   : > { %7379 = vmatpush3.bf16.msra.mxu0 %v8057_v2  ;;  %v8107_v2 = vld [vmem:[%s8186_s12 + $0xf40] sm:$0xff]  }
 0x1e5   : > { %7401 = vmatpush3.bf16.msra.mxu1 %v8058_v3  ;;  %7380 = vmatprep.subr.bf16.mxu0 %v8059_v4  ;;  %v8108_v3 = vld [vmem:[%s8186_s12 + $0xfc0] sm:$0xff]  }
 0x1e6   : > { %7402 = vmatprep.subr.bf16.mxu1 %v8060_v5  ;;  %v8109_v4 = vld [vmem:[%s8186_s12 + $0xf00] sm:$0xff]  }
 0x1e7   : > { %v8110_v5 = vld [vmem:[%s8186_s12 + $0xf80] sm:$0xff]  }
 0x1e8   : > { %7381 = vmatpush3.bf16.msra.mxu0 %v8061_v6  ;;  %v325_v6 = vld [vmem:[%s8181_s8 + $0xf0] sm:$0xff] }
 0x1e9   : > { %7403 = vmatpush3.bf16.msra.mxu1 %v8062_v7  ;;  %7382 = vmatprep.subr.bf16.mxu0 %v8063_v8  ;;  %v326_v7 = vld [vmem:[%s8181_s8 + $0xf8] sm:$0xff] }
 0x1ea   : > { %7404 = vmatprep.subr.bf16.mxu1 %v8064_v9  ;;  %v6233_v9 = vcombine.low %v325_v6, %v325_v6 }
 0x1ec   : > { %7383 = vmatpush3.bf16.msra.mxu0 %v8065_v10  ;;  %v6234_v10 = vcombine.high %v325_v6, %v325_v6 }
 0x1ed   : > { %7405 = vmatpush3.bf16.msra.mxu1 %v8066_v11  ;;  %7384 = vmatprep.subr.bf16.mxu0 %v8067_v12  ;;  %v6235_v11 = vcombine.low %v326_v7, %v326_v7 }
 0x1ee   : > { %7406 = vmatprep.subr.bf16.mxu1 %v8068_v13  ;;  %v6236_v13 = vcombine.high %v326_v7, %v326_v7 }
 0x1f0   : > { %7385 = vmatpush3.bf16.msra.mxu0 %v8069_v14 }
 0x1f1   : > { %7407 = vmatpush3.bf16.msra.mxu1 %v8070_v15  ;;  %7386 = vmatprep.subr.bf16.mxu0 %v8071_v16 }
 0x1f2   : > { %7408 = vmatprep.subr.bf16.mxu1 %v8072_v17 }
 0x1f4   : > { %7387 = vmatpush3.bf16.msra.mxu0 %v8073_v18 }
 0x1f5   : > { %7409 = vmatpush3.bf16.msra.mxu1 %v8074_v19  ;;  %7416 = vmatprep.subr.bf16.mxu0 %v8079_v28 }
 0x1f6   : > { %7438 = vmatprep.subr.bf16.mxu1 %v8080_v29 }
 0x1f7   : > { %v7124_v22 = vpop.f32.mrf.mxu0  ;;  %5800 = vmatmul.mubr.bf16.vlgmr.msra.gmra.mxu0 %v6229_v23 }
 0x1f8   : > { %v7146_v27 = vpop.f32.mrf.mxu1  ;;  %5840 = vmatmul.mubr.bf16.vlgmr.msra.gmra.mxu1 %v6231_v25  ;;  %7417 = vmatpush3.bf16.msra.mxu0 %v8081_v31 }
 0x1f9   : > { %v7125_v30 = vpop.f32.mrf.mxu0  ;;  %7439 = vmatpush3.bf16.msra.mxu1 %v8082_v34  ;;  %7418 = vmatprep.subr.bf16.mxu0 %v8083_v39 }
 0x1fa   : > { %v7126_v32 = vadd.f32 %v7125_v30, %v7124_v22  ;;  %v7147_v33 = vpop.f32.mrf.mxu1  ;;  %7440 = vmatprep.subr.bf16.mxu1 %v8084_v40  ;;  %5879 = vmatprep.mubr.bf16.mxu0 %v6234_v10 }
 0x1fb   : > { %v7148_v35 = vadd.f32 %v7147_v33, %v7146_v27  ;;  %v7127_v36 = vpop.f32.mrf.mxu0  ;;  %5919 = vmatprep.mubr.bf16.mxu1 %v6236_v13 }
 0x1fc   : > { %v5322_v37 = vadd.f32 %v7126_v32, %v8692_v57  ;;  %v7149_v38 = vpop.f32.mrf.mxu1  ;;  %7419 = vmatpush3.bf16.msra.mxu0 %v8085_v43  ;;  %v8098_v57 = vld [vmem:[%s8186_s12 + $0xf98] sm:$0xff]  }
 0x1fd   : > { %v7128_v41 = vpop.f32.mrf.mxu0  ;;  %7441 = vmatpush3.bf16.msra.mxu1 %v8086_v45  ;;  %7420 = vmatprep.subr.bf16.mxu0 %v8087_v46 }
 0x1fe   : > { %v8729_v42 = vadd.f32 %v7148_v35, %v5322_v37  ;;  %v7150_v44 = vpop.f32.mrf.mxu1  ;;  %7442 = vmatprep.subr.bf16.mxu1 %v8088_v47 }
 0x200   : > { %7421 = vmatpush3.bf16.msra.mxu0 %v8089_v48 }
 0x201   : > { %7443 = vmatpush3.bf16.msra.mxu1 %v8090_v49  ;;  %7422 = vmatprep.subr.bf16.mxu0 %v8091_v50 }
 0x202   : > { %7444 = vmatprep.subr.bf16.mxu1 %v8092_v51 }
 0x204   : > { %7423 = vmatpush3.bf16.msra.mxu0 %v8093_v52 }
 0x205   : > { %7445 = vmatpush3.bf16.msra.mxu1 %v8094_v53  ;;  %7424 = vmatprep.subr.bf16.mxu0 %v8095_v54 }
 0x206   : > { %7446 = vmatprep.subr.bf16.mxu1 %v8096_v55 }
 0x208   : > { %7425 = vmatpush3.bf16.msra.mxu0 %v8097_v56 }
 0x209   : > { %7447 = vmatpush3.bf16.msra.mxu1 %v8098_v57  ;;  %7426 = vmatprep.subr.bf16.mxu0 %v8099_v58 }
 0x20a   : > { %7448 = vmatprep.subr.bf16.mxu1 %v8100_v59 }
 0x20c   : > { %7427 = vmatpush3.bf16.msra.mxu0 %v8101_v60 }
 0x20d   : > { %7449 = vmatpush3.bf16.msra.mxu1 %v8102_v61  ;;  %7428 = vmatprep.subr.bf16.mxu0 %v8103_v62 }
 0x20e   : > { %7450 = vmatprep.subr.bf16.mxu1 %v8104_v63 }
 0x210   : > { %7429 = vmatpush3.bf16.msra.mxu0 %v8105_v0 }
 0x211   : > { %7451 = vmatpush3.bf16.msra.mxu1 %v8106_v1  ;;  %7430 = vmatprep.subr.bf16.mxu0 %v8107_v2 }
 0x212   : > { %7452 = vmatprep.subr.bf16.mxu1 %v8108_v3 }
 0x214   : > { %7431 = vmatpush3.bf16.msra.mxu0 %v8109_v4 }
 0x215   : > { %7453 = vmatpush3.bf16.msra.mxu1 %v8110_v5 }
 0x217   : > { %v7168_v8 = vpop.f32.mrf.mxu0  ;;  %5880 = vmatmul.mubr.bf16.vlgmr.msra.gmra.mxu0 %v6233_v9 }
 0x218   : > { %v7190_v12 = vpop.f32.mrf.mxu1  ;;  %5920 = vmatmul.mubr.bf16.vlgmr.msra.gmra.mxu1 %v6235_v11 }
 0x219   : > { %v7169_v14 = vpop.f32.mrf.mxu0 }
 0x21a   : > { %v7170_v15 = vadd.f32 %v7169_v14, %v7168_v8  ;;  %v7191_v16 = vpop.f32.mrf.mxu1 }
 0x21b   : > { %v7192_v17 = vadd.f32 %v7191_v16, %v7190_v12  ;;  %v7171_v18 = vpop.f32.mrf.mxu0 }
 0x21c   : > { %v5402_v19 = vadd.f32 %v7170_v15, %v8729_v42  ;;  %v7193_v20 = vpop.f32.mrf.mxu1 }
 0x21d   : > { %v7172_v21 = vpop.f32.mrf.mxu0 }
 0x21e   : > { %v5442_v22 = vadd.f32 %v7192_v17, %v5402_v19  ;;  %v7194_v23 = vpop.f32.mrf.mxu1 }
 0x237   : > { %v7212_v24 = vpop.f32.mrf.mxu0 }
 0x238   : > { %v7234_v25 = vpop.f32.mrf.mxu1 }
 0x239   : > { %v7213_v26 = vpop.f32.mrf.mxu0 }
 0x23a   : > { %v7235_v27 = vpop.f32.mrf.mxu1  ;;  %v7214_v28 = vadd.f32 %v7213_v26, %v7212_v24 }
 0x23b   : > { %v7236_v29 = vadd.f32 %v7235_v27, %v7234_v25  ;;  %v7215_v30 = vpop.f32.mrf.mxu0 }
 0x23c   : > { %v7237_v31 = vpop.f32.mrf.mxu1  ;;  %v5482_v32 = vadd.f32 %v7214_v28, %v5442_v22 }
 0x23d   : > { %v7216_v33 = vpop.f32.mrf.mxu0 }
 0x23e   : > { %v7238_v34 = vpop.f32.mrf.mxu1  ;;  %v5522_v35 = vadd.f32 %v7236_v29, %v5482_v32  ;;  %v294_v29 = vld [vmem:[#allocation2] sm:$0xff] }
 0x257   : > { %v7256_v36 = vpop.f32.mrf.mxu0 }
 0x258   : > { %v7278_v37 = vpop.f32.mrf.mxu1 }
 0x259   : > { %v7257_v38 = vpop.f32.mrf.mxu0 }
 0x25a   : > { %v7258_v39 = vadd.f32 %v7257_v38, %v7256_v36  ;;  %v7279_v40 = vpop.f32.mrf.mxu1 }
 0x25b   : > { %v7280_v41 = vadd.f32 %v7279_v40, %v7278_v37  ;;  %v7259_v42 = vpop.f32.mrf.mxu0 }
 0x25c   : > { %v5562_v43 = vadd.f32 %v7258_v39, %v5522_v35  ;;  %v7281_v44 = vpop.f32.mrf.mxu1 }
 0x25d   : > { %v7260_v45 = vpop.f32.mrf.mxu0 }
 0x25e   : > { %v5602_v46 = vadd.f32 %v7280_v41, %v5562_v43  ;;  %v7282_v47 = vpop.f32.mrf.mxu1 }
 0x277   : > { %v7300_v48 = vpop.f32.mrf.mxu0 }
 0x278   : > { %v7322_v49 = vpop.f32.mrf.mxu1 }
 0x279   : > { %v7301_v50 = vpop.f32.mrf.mxu0 }
 0x27a   : > { %v7302_v51 = vadd.f32 %v7301_v50, %v7300_v48  ;;  %v7323_v52 = vpop.f32.mrf.mxu1 }
 0x27b   : > { %v7324_v53 = vadd.f32 %v7323_v52, %v7322_v49  ;;  %v7303_v54 = vpop.f32.mrf.mxu0 }
 0x27c   : > { %v5642_v55 = vadd.f32 %v7302_v51, %v5602_v46  ;;  %v7325_v56 = vpop.f32.mrf.mxu1 }
 0x27d   : > { %v7304_v57 = vpop.f32.mrf.mxu0 }
 0x27e   : > { %v5682_v58 = vadd.f32 %v7324_v53, %v5642_v55  ;;  %v7326_v59 = vpop.f32.mrf.mxu1 }
 0x297   : > { %v7344_v60 = vpop.f32.mrf.mxu0 }
 0x298   : > { %v7366_v61 = vpop.f32.mrf.mxu1 }
 0x299   : > { %v7345_v62 = vpop.f32.mrf.mxu0 }
 0x29a   : > { %v7367_v63 = vpop.f32.mrf.mxu1  ;;  %v7346_v12 = vadd.f32 %v7345_v62, %v7344_v60 }
 0x29b   : > { %v7347_v0 = vpop.f32.mrf.mxu0  ;;  %v7368_v14 = vadd.f32 %v7367_v63, %v7366_v61 }
 0x29c   : > { %v7369_v1 = vpop.f32.mrf.mxu1  ;;  %v5722_v13 = vadd.f32 %v7346_v12, %v5682_v58 }
 0x29d   : > { %v7348_v2 = vpop.f32.mrf.mxu0 }
 0x29e   : > { %v7370_v3 = vpop.f32.mrf.mxu1  ;;  %v5762_v16 = vadd.f32 %v7368_v14, %v5722_v13 }
 0x2b7   : > { %v7388_v4 = vpop.f32.mrf.mxu0 }
 0x2b8   : > { %v7410_v5 = vpop.f32.mrf.mxu1 }
 0x2b9   : > { %v7389_v6 = vpop.f32.mrf.mxu0 }
 0x2ba   : > { %v7411_v7 = vpop.f32.mrf.mxu1  ;;  %v7390_v15 = vadd.f32 %v7389_v6, %v7388_v4 }
 0x2bb   : > { %v7391_v8 = vpop.f32.mrf.mxu0  ;;  %v7412_v18 = vadd.f32 %v7411_v7, %v7410_v5 }
 0x2bc   : > { %v7413_v9 = vpop.f32.mrf.mxu1  ;;  %v5802_v17 = vadd.f32 %v7390_v15, %v5762_v16 }
 0x2bd   : > { %v7392_v10 = vpop.f32.mrf.mxu0 }
 0x2be   : > { %v7414_v11 = vpop.f32.mrf.mxu1  ;;  %v5842_v22 = vadd.f32 %v7412_v18, %v5802_v17 }
 0x2d7   : > { %v7432_v19 = vpop.f32.mrf.mxu0 }
 0x2d8   : > { %v7454_v20 = vpop.f32.mrf.mxu1 }
 0x2d9   : > { %v7433_v21 = vpop.f32.mrf.mxu0 }
 0x2da   : > { %v7434_v23 = vadd.f32 %v7433_v21, %v7432_v19  ;;  %v7455_v24 = vpop.f32.mrf.mxu1 }
 0x2db   : > { %v7435_v25 = vpop.f32.mrf.mxu0  ;;  %v7456_v27 = vadd.f32 %v7455_v24, %v7454_v20 }
 0x2dc   : > { %v5882_v26 = vadd.f32 %v7434_v23, %v5842_v22  ;;  %v7457_v28 = vpop.f32.mrf.mxu1 }
 0x2dd   : > { %v7436_v30 = vpop.f32.mrf.mxu0 }
 0x2de   : > { %v5922_v31 = vadd.f32 %v7456_v27, %v5882_v26  ;;  %v7458_v32 = vpop.f32.mrf.mxu1  ;;  %5932 = sbr.rel (%p6749_p6) target bundleno = 1165 (0x48d), region = 56 }
 0x2e0   : > { %v5927_v33 = vadd.f32 %v5922_v31, %v294_v29 }
 0x2e2   : > { %5928 = vst [vmem:[#allocation2] sm:$0xff] %v5927_v33 }
 0x2e3   : > { %v5958_v34 = vld [vmem:[%s8861_s3 + $0x78] sm:$0xff]  ;;  %v8124_v35 = vmov 0.0   ;;  %v5957_v36 = vld [vmem:[%s8861_s3 + $0x70] sm:$0xff]  ;;  %vm8125_vm0 = vmmov 0   ;;  %v5956_v37 = vld [vmem:[%s8861_s3 + $0x68] sm:$0xff]  ;;  %vm6048_vm1 = vcmask 261120  }
 0x2e4   : > { %7482 = vmatprep.subr.mxu0 %v8124_v35  ;;  %7514 = vmatprep.mubr.msk.f32.mxu0 %vm8125_vm0, %v8124_v35  ;;  %v5955_v38 = vld [vmem:[%s8861_s3 + $0x60] sm:$0xff]  ;;  %v6040_v39 = vld [vmem:[%s8863_s5 + $0x18] sm:$0xff]  ;;  %v5953_v41 = vld [vmem:[%s8861_s3 + $0x50] sm:$0xff]  ;;  %vm6122_vm2 = vcmask 31744  }
 0x2e5   : > { %7483 = vmatpush3.msra.mxu0 %v5958_v34  ;;  %7517 = vmatprep.subr.mxu1 %v8124_v35  ;;  %v5954_v40 = vld [vmem:[%s8861_s3 + $0x58] sm:$0xff]  ;;  %v5952_v42 = vld [vmem:[%s8861_s3 + $0x48] sm:$0xff]  ;;  %v5951_v43 = vld [vmem:[%s8861_s3 + $0x40] sm:$0xff] }
 0x2e6   : > { %7484 = vmatprep.subr.mxu0 %v8124_v35  ;;  %7525 = vmatprep.mubr.msk.f32.mxu1 %vm8125_vm0, %v8124_v35  ;;  %v5950_v44 = vld [vmem:[%s8861_s3 + $0x38] sm:$0xff]  ;;  %v5949_v45 = vld [vmem:[%s8861_s3 + $0x30] sm:$0xff]  ;;  %v5948_v46 = vld [vmem:[%s8861_s3 + $0x28] sm:$0xff] }
 0x2e7   : > { %7485 = vmatpush3.msra.mxu0 %v5957_v36  ;;  %7518 = vmatpush3.msra.mxu1 %v6040_v39  ;;  %v5947_v47 = vld [vmem:[%s8861_s3 + $0x20] sm:$0xff]  ;;  %v5946_v50 = vld [vmem:[%s8861_s3 + $0x18] sm:$0xff]  ;;  %v5945_v51 = vld [vmem:[%s8861_s3 + $0x10] sm:$0xff] }
 0x2e8   : > { %7486 = vmatprep.subr.mxu0 %v8124_v35  ;;  %7519 = vmatprep.subr.mxu1 %v8124_v35  ;;  %v6750_v49 = vld [vmem:[%s8860_s2] ss:$0 sm:$0xff]  ;;  %v5944_v53 = vld [vmem:[%s8861_s3 + $0x8] sm:$0xff]  ;;  %v6039_v56 = vld [vmem:[%s8863_s5 + $0x10] sm:$0xff] }
 0x2e9   : > { %7487 = vmatpush3.msra.mxu0 %v5956_v37  ;;  %v5933_v48 = vld [vmem:[#allocation2] sm:$0xff]  ;;  %7520 = vmatpush3.msra.mxu1 %v6039_v56  ;;  %v6038_v57 = vld [vmem:[%s8863_s5 + $0x8] sm:$0xff] }
 0x2ea   : > { %7488 = vmatprep.subr.mxu0 %v8124_v35  ;;  %v5941_v52 = vadd.f32 %v6750_v49, %v5933_v48  ;;  %v5943_v54 = vld [vmem:[%s8861_s3] sm:$0xff]  ;;  %7521 = vmatprep.subr.mxu1 %v8124_v35 }
 0x2eb   : > { %7489 = vmatpush3.msra.mxu0 %v5955_v38  ;;  %7522 = vmatpush3.msra.mxu1 %v6038_v57  ;;  %v6037_v58 = vld [vmem:[%s8863_s5] sm:$0xff] }
 0x2ec   : > { %7490 = vmatprep.subr.mxu0 %v8124_v35  ;;  %v5942_v55 = vmax.f32 %v5941_v52, 0.0  ;;  %7523 = vmatprep.subr.mxu1 %v8124_v35  ;;  %v6751_v59 = vld [vmem:[%s8862_s4] ss:$0 sm:$0xff] }
 0x2ed   : > { %7491 = vmatpush3.msra.mxu0 %v5954_v40  ;;  %7524 = vmatpush3.msra.mxu1 %v6037_v58  ;;  %v6752_v0 = vld [vmem:[%s8864_s6] ss:$0 sm:$0xff] }
 0x2ee   : > { %7492 = vmatprep.subr.mxu0 %v8124_v35 }
 0x2ef   : > { %7493 = vmatpush3.msra.mxu0 %v5953_v41 }
 0x2f0   : > { %7494 = vmatprep.subr.mxu0 %v8124_v35 }
 0x2f1   : > { %7495 = vmatpush3.msra.mxu0 %v5952_v42 }
 0x2f2   : > { %7496 = vmatprep.subr.mxu0 %v8124_v35 }
 0x2f3   : > { %7497 = vmatpush3.msra.mxu0 %v5951_v43 }
 0x2f4   : > { %7498 = vmatprep.subr.mxu0 %v8124_v35 }
 0x2f5   : > { %7499 = vmatpush3.msra.mxu0 %v5950_v44 }
 0x2f6   : > { %7500 = vmatprep.subr.mxu0 %v8124_v35 }
 0x2f7   : > { %7501 = vmatpush3.msra.mxu0 %v5949_v45 }
 0x2f8   : > { %7502 = vmatprep.subr.mxu0 %v8124_v35 }
 0x2f9   : > { %7503 = vmatpush3.msra.mxu0 %v5948_v46 }
 0x2fa   : > { %7504 = vmatprep.subr.mxu0 %v8124_v35 }
 0x2fb   : > { %7505 = vmatpush3.msra.mxu0 %v5947_v47 }
 0x2fc   : > { %7506 = vmatprep.subr.mxu0 %v8124_v35 }
 0x2fd   : > { %7507 = vmatpush3.msra.mxu0 %v5946_v50 }
 0x2fe   : > { %7508 = vmatprep.subr.mxu0 %v8124_v35 }
 0x2ff   : > { %7509 = vmatpush3.msra.mxu0 %v5945_v51 }
 0x300   : > { %7510 = vmatprep.subr.mxu0 %v8124_v35 }
 0x301   : > { %7511 = vmatpush3.msra.mxu0 %v5944_v53 }
 0x302   : > { %7512 = vmatprep.subr.mxu0 %v8124_v35 }
 0x303   : > { %7513 = vmatpush3.msra.mxu0 %v5943_v54 }
 0x304   : > { %7515 = vmatmul.mubr.f32.vlgmr.msra.gmra.mxu0 %v5942_v55 }
 0x3c4   : > { %v6032_v60 = vpop.f32.mrf.mxu0 }
 0x3c5   : > { %v6033_v61 = vadd.f32 %v6751_v59, %v6032_v60 }
 0x3c6   : > { %v7516_v62 = vpop.f32.mrf.mxu0 }
 0x3c7   : > { %v6036_v63 = vmax.f32 %v6033_v61, 0.0 }
 0x3c9   : > { %7526 = vmatmul.mubr.msk.f32.vlgmr.msra.gmra.mxu1 %vm6048_vm1, %v6036_v63 }
 0x489   : > { %v6118_v1 = vpop.f32.mrf.mxu1 }
 0x48a   : > { %v6119_v2 = vadd.f32 %v6752_v0, %v6118_v1 }
 0x48b   : > { %v7527_v3 = vpop.f32.mrf.mxu1 }
 0x48c   : > { %6123 = vst.msk [vmem:[%s8865_s7] sm:$0xff] %vm6122_vm2, %v6119_v2 }
 0x48d PF: > { %s17_s24 = sadd.s32 1, %s8121_s24  }
 0x48e   : > { %p14_p7 = scmp.ge.s32.totalorder %s17_s24, 5  }
 0x490   :  { %16 = sbr.rel (!%p14_p7) target bundleno = 1 (0x1), region = 85 }

</bundles_post_ra>
